<compile_context>
chip_gen: v7x
topology: tpu7x:2x2x1
jax: 0.10.0
libtpu: 0.0.40
codegen_flags: <defaults>
</compile_context>

<pallas_src>
from functools import partial

import jax
import jax.numpy as jnp
from jax.experimental import pallas as pl
from jax.experimental.pallas import tpu as pltpu

# Model dims.
D_IN, D_H, D_OUT = 2, 20, 3

# Batch strips packed into sublanes (2*NS = 16 input rows, 3*NS = 24 output
# rows -> both exact multiples of 8, zero sublane padding).
NS = 8
ALIGN = NS * 128  # batch tile / padding granularity (lane-dense per strip)

# Packed parameter slab layout (rows sublane-aligned to multiples of 8).
_L1_ROW, _L2_ROW, _L3_ROW = 0, 24, 48
_SLAB_ROWS, _SLAB_COLS = 56, 24  # cols = max fan_in (20) + 1 bias col, padded


def _round_up(a, m):
    return ((a + m - 1) // m) * m


def _cdiv(a, m):
    return (a + m - 1) // m


def pack_params(w1, b1, w2, b2, w3, b3):
    """Pack PyTorch-layout weights (out,in) and biases (out,) into one f32 slab."""
    slab = jnp.zeros((_SLAB_ROWS, _SLAB_COLS), jnp.float32)
    slab = slab.at[_L1_ROW:_L1_ROW + D_H, :D_IN].set(w1)
    slab = slab.at[_L1_ROW:_L1_ROW + D_H, D_IN].set(b1)
    slab = slab.at[_L2_ROW:_L2_ROW + D_H, :D_H].set(w2)
    slab = slab.at[_L2_ROW:_L2_ROW + D_H, D_H].set(b2)
    slab = slab.at[_L3_ROW:_L3_ROW + D_OUT, :D_H].set(w3)
    slab = slab.at[_L3_ROW:_L3_ROW + D_OUT, D_H].set(b3)
    return slab


def mlp_kernel(p_ref, x_ref, o_ref):
    # p_ref: (56, 24) packed params, VMEM-resident across grid steps.
    # x_ref: (2*NS, TB//NS)  row f*NS + s = input feature f, batch strip s.
    # o_ref: (3*NS, TB//NS)  row f*NS + s = output feature f, batch strip s.
    p = p_ref[...]
    x = x_ref[...]

    w1 = p[_L1_ROW:_L1_ROW + D_H, :D_IN]            # (20, 2)
    b1 = p[_L1_ROW:_L1_ROW + D_H, D_IN:D_IN + 1]    # (20, 1)
    w2 = p[_L2_ROW:_L2_ROW + D_H, :D_H]             # (20, 20)
    b2 = p[_L2_ROW:_L2_ROW + D_H, D_H:D_H + 1]      # (20, 1)
    w3 = p[_L3_ROW:_L3_ROW + D_OUT, :D_H]           # (3, 20)
    b3 = p[_L3_ROW:_L3_ROW + D_OUT, D_H:D_H + 1]    # (3, 1)

    # Static (unrolled) loop over the NS batch strips packed into sublanes.
    for s in range(NS):
        x0 = x[s:s + 1, :]            # (1, TBs) feature 0 of strip s
        x1 = x[NS + s:NS + s + 1, :]  # (1, TBs) feature 1 of strip s

        # fc1 (K=2): two VPU broadcast-FMAs instead of a tiny MXU matmul.
        h1 = jnp.maximum(w1[:, 0:1] * x0 + w1[:, 1:2] * x1 + b1, 0.0)  # (20, TBs)

        # fc2 + relu (MXU, f32 accumulation).
        h2 = jnp.dot(w2, h1, preferred_element_type=jnp.float32) + b2
        h2 = jnp.maximum(h2, 0.0)                                       # (20, TBs)

        # fc3 + sigmoid (tanh form -> EUP slot, VPU stays free).
        h3 = jnp.dot(w3, h2, preferred_element_type=jnp.float32) + b3   # (3, TBs)
        y = 0.5 * jnp.tanh(0.5 * h3) + 0.5

        # Store into the packed (feature-major, strip-minor) output rows.
        for f in range(D_OUT):
            o_ref[f * NS + s:f * NS + s + 1, :] = y[f:f + 1, :]


@partial(jax.jit, static_argnames=("tb",))
def model1_forward(x, slab, *, tb=32768):
    """x: (B, 2) f32 -> (B, 3) f32 (same semantics as Model1.forward)."""
    B = x.shape[0]

    # --- Tile-size selection ---------------------------------------------
    # TB is always a multiple of ALIGN (=1024), so TB//NS is lane-dense.
    # Keep >=2 grid tiles whenever the batch allows (megacore on v7x), and
    # make each step move hundreds of KiB so per-step overhead is amortized.
    tb_al = max(_round_up(tb, ALIGN), ALIGN)
    b_al = _round_up(max(B, 1), ALIGN)
    if b_al <= ALIGN:
        TB = ALIGN
    elif b_al <= tb_al:
        TB = _round_up(_cdiv(b_al, 2), ALIGN)           # ~2 tiles for megacore
    else:
        n_tiles = _cdiv(b_al, tb_al)
        TB = min(_round_up(_cdiv(b_al, n_tiles), ALIGN), tb_al)
    b_pad = _round_up(b_al, TB)
    grid = (b_pad // TB,)
    TBs = TB // NS

    # --- Strip-packed, fully dense input layout ---------------------------
    # (2, b_pad) -> (16, b_pad/8) is a pure row-major reshape; XLA fuses the
    # transpose + pad + reshape into one dense pass over the useful bytes.
    xt = jnp.zeros((D_IN, b_pad), jnp.float32).at[:, :B].set(x.T)
    x_packed = xt.reshape(D_IN * NS, b_pad // NS)

    flops = 2 * b_pad * (D_IN * D_H + D_H * D_H + D_H * D_OUT)
    bytes_accessed = 4 * (D_IN * b_pad + D_OUT * b_pad + _SLAB_ROWS * _SLAB_COLS)

    o_packed = pl.pallas_call(
        mlp_kernel,
        out_shape=jax.ShapeDtypeStruct((D_OUT * NS, b_pad // NS), jnp.float32),
        grid_spec=pltpu.PrefetchScalarGridSpec(
            num_scalar_prefetch=0,
            grid=grid,
            in_specs=[
                # Packed params: constant index map -> stays VMEM-resident.
                pl.BlockSpec((_SLAB_ROWS, _SLAB_COLS), lambda i: (0, 0)),
                # Activations: tiled over the packed batch (lane) axis.
                pl.BlockSpec((D_IN * NS, TBs), lambda i: (0, i)),
            ],
            out_specs=pl.BlockSpec((D_OUT * NS, TBs), lambda i: (0, i)),
        ),
        compiler_params=pltpu.CompilerParams(
            dimension_semantics=("parallel",),
            vmem_limit_bytes=32 * 1024 * 1024,  # v5e default (16 MiB) is too low
        ),
        cost_estimate=pl.CostEstimate(
            flops=flops,
            transcendentals=b_pad * D_OUT,
            bytes_accessed=bytes_accessed),
    )(slab, x_packed)

    # Packed (24, b_pad/8) -> (3, b_pad) is again a pure reshape; final
    # slice + transpose is required only by the (B, 3) torch interface.
    out_t = o_packed.reshape(D_OUT, b_pad)
    return out_t[:, :B].T


def init_params(key):
    """PyTorch nn.Linear default init: U(-1/sqrt(fan_in), +1/sqrt(fan_in))."""
    def linear(k, fan_in, fan_out):
        kw, kb = jax.random.split(k)
        bound = 1.0 / float(fan_in) ** 0.5
        w = jax.random.uniform(kw, (fan_out, fan_in), jnp.float32, -bound, bound)
        b = jax.random.uniform(kb, (fan_out,), jnp.float32, -bound, bound)
        return w, b

    k1, k2, k3 = jax.random.split(key, 3)
    w1, b1 = linear(k1, D_IN, D_H)
    w2, b2 = linear(k2, D_H, D_H)
    w3, b3 = linear(k3, D_H, D_OUT)
    return (w1, b1, w2, b2, w3, b3)


def reference_forward(x, raw_params):
    w1, b1, w2, b2, w3, b3 = raw_params
    h = jnp.maximum(x @ w1.T + b1, 0.0)
    h = jnp.maximum(h @ w2.T + b2, 0.0)
    return jax.nn.sigmoid(h @ w3.T + b3)


if __name__ == "__main__":
    key = jax.random.PRNGKey(0)
    kx, kp = jax.random.split(key)

    raw = init_params(kp)
    slab = pack_params(*raw)

    # Small canonical test (B=8).
    batch = 8
    x = jax.random.normal(kx, (batch, D_IN), dtype=jnp.float32)
    out = jax.block_until_ready(model1_forward(x, slab))
    ref = reference_forward(x, raw)
    assert out.shape == (batch, D_OUT)
    assert jnp.allclose(out, ref, atol=5e-5, rtol=5e-5)

    # Ragged batch spanning multiple grid tiles (exercises tiling, strip
    # packing and batch padding).
    x2 = jax.random.normal(jax.random.PRNGKey(1), (2500, D_IN), dtype=jnp.float32)
    out2 = jax.block_until_ready(model1_forward(x2, slab, tb=1024))
    ref2 = reference_forward(x2, raw)
    assert out2.shape == (2500, D_OUT)
    assert jnp.allclose(out2, ref2, atol=5e-5, rtol=5e-5)

    print("KERNEL_OK")
</pallas_src>

<mosaic_0001>
module attributes {stable_mosaic.version = 11 : i64} {
  func.func @mlp_kernel(%arg0: i32, %arg1: memref<56x24xf32, #tpu.memory_space<vmem>>, %arg2: memref<16x128xf32, #tpu.memory_space<vmem>>, %arg3: memref<24x128xf32, #tpu.memory_space<vmem>>) attributes {dimension_semantics = [#tpu.dimension_semantics<parallel>], iteration_bounds = array<i64: 1>, scalar_prefetch = 0 : i64, scratch_operands = 0 : i64, tpu.core_type = #tpu.core_type<tc>, window_params = [{pipeline_mode = #tpu.pipeline_mode<synchronous>, transform_indices = @transform_0, window_bounds = array<i64: 56, 24>}, {transform_indices = @transform_1, window_bounds = array<i64: 16, 128>}, {transform_indices = @transform_2, window_bounds = array<i64: 24, 128>}]} {
    %c0 = arith.constant 0 : index
    %c0_0 = arith.constant 0 : index
    %0 = vector.load %arg1[%c0, %c0_0] : memref<56x24xf32, #tpu.memory_space<vmem>>, vector<56x24xf32>
    %c0_1 = arith.constant 0 : index
    %c0_2 = arith.constant 0 : index
    %1 = vector.load %arg2[%c0_1, %c0_2] : memref<16x128xf32, #tpu.memory_space<vmem>>, vector<16x128xf32>
    %2 = vector.extract_strided_slice %0 {offsets = [0, 0], sizes = [20, 2], strides = [1, 1]} : vector<56x24xf32> to vector<20x2xf32>
    %3 = vector.extract_strided_slice %0 {offsets = [0, 2], sizes = [20, 1], strides = [1, 1]} : vector<56x24xf32> to vector<20x1xf32>
    %4 = vector.extract_strided_slice %0 {offsets = [24, 0], sizes = [20, 20], strides = [1, 1]} : vector<56x24xf32> to vector<20x20xf32>
    %5 = vector.extract_strided_slice %0 {offsets = [24, 20], sizes = [20, 1], strides = [1, 1]} : vector<56x24xf32> to vector<20x1xf32>
    %6 = vector.extract_strided_slice %0 {offsets = [48, 0], sizes = [3, 20], strides = [1, 1]} : vector<56x24xf32> to vector<3x20xf32>
    %7 = vector.extract_strided_slice %0 {offsets = [48, 20], sizes = [3, 1], strides = [1, 1]} : vector<56x24xf32> to vector<3x1xf32>
    %8 = vector.extract_strided_slice %1 {offsets = [0, 0], sizes = [1, 128], strides = [1, 1]} : vector<16x128xf32> to vector<1x128xf32>
    %9 = vector.extract_strided_slice %1 {offsets = [8, 0], sizes = [1, 128], strides = [1, 1]} : vector<16x128xf32> to vector<1x128xf32>
    %10 = vector.extract_strided_slice %2 {offsets = [0, 0], sizes = [20, 1], strides = [1, 1]} : vector<20x2xf32> to vector<20x1xf32>
    %11 = vector.broadcast %10 : vector<20x1xf32> to vector<20x128xf32>
    %12 = vector.broadcast %8 : vector<1x128xf32> to vector<20x128xf32>
    %13 = arith.mulf %11, %12 : vector<20x128xf32>
    %14 = vector.extract_strided_slice %2 {offsets = [0, 1], sizes = [20, 1], strides = [1, 1]} : vector<20x2xf32> to vector<20x1xf32>
    %15 = vector.broadcast %14 : vector<20x1xf32> to vector<20x128xf32>
    %16 = vector.broadcast %9 : vector<1x128xf32> to vector<20x128xf32>
    %17 = arith.mulf %15, %16 : vector<20x128xf32>
    %18 = arith.addf %13, %17 : vector<20x128xf32>
    %19 = vector.broadcast %3 : vector<20x1xf32> to vector<20x128xf32>
    %20 = arith.addf %18, %19 : vector<20x128xf32>
    %cst = arith.constant 0.000000e+00 : f32
    %21 = vector.broadcast %cst : f32 to vector<20x128xf32>
    %22 = arith.maximumf %20, %21 : vector<20x128xf32>
    %cst_3 = arith.constant dense<0.000000e+00> : vector<20x128xf32>
    %23 = tpu.matmul %4, %22, %cst_3 {dimension_numbers = #tpu.dot_dimension_numbers<[1], [0], [0], [1], [0, 0, 1, 1], [], []>} : vector<20x20xf32>, vector<20x128xf32>, vector<20x128xf32> -> vector<20x128xf32>
    %24 = vector.broadcast %5 : vector<20x1xf32> to vector<20x128xf32>
    %25 = arith.addf %23, %24 : vector<20x128xf32>
    %cst_4 = arith.constant 0.000000e+00 : f32
    %26 = vector.broadcast %cst_4 : f32 to vector<20x128xf32>
    %27 = arith.maximumf %25, %26 : vector<20x128xf32>
    %cst_5 = arith.constant dense<0.000000e+00> : vector<3x128xf32>
    %28 = tpu.matmul %6, %27, %cst_5 {dimension_numbers = #tpu.dot_dimension_numbers<[1], [0], [0], [1], [0, 0, 1, 1], [], []>} : vector<3x20xf32>, vector<20x128xf32>, vector<3x128xf32> -> vector<3x128xf32>
    %29 = vector.broadcast %7 : vector<3x1xf32> to vector<3x128xf32>
    %30 = arith.addf %28, %29 : vector<3x128xf32>
    %cst_6 = arith.constant 5.000000e-01 : f32
    %31 = vector.broadcast %cst_6 : f32 to vector<3x128xf32>
    %32 = arith.mulf %31, %30 : vector<3x128xf32>
    %33 = math.tanh %32 : vector<3x128xf32>
    %cst_7 = arith.constant 5.000000e-01 : f32
    %34 = vector.broadcast %cst_7 : f32 to vector<3x128xf32>
    %35 = arith.mulf %34, %33 : vector<3x128xf32>
    %cst_8 = arith.constant 5.000000e-01 : f32
    %36 = vector.broadcast %cst_8 : f32 to vector<3x128xf32>
    %37 = arith.addf %35, %36 : vector<3x128xf32>
    %38 = vector.extract_strided_slice %37 {offsets = [0, 0], sizes = [1, 128], strides = [1, 1]} : vector<3x128xf32> to vector<1x128xf32>
    %c0_9 = arith.constant 0 : index
    %c0_10 = arith.constant 0 : index
    %39 = vector.load %arg3[%c0_9, %c0_10] : memref<24x128xf32, #tpu.memory_space<vmem>>, vector<1x128xf32>
    tpu.vector_store %arg3[%c0_9, %c0_10], %38 {strides = array<i32>} : memref<24x128xf32, #tpu.memory_space<vmem>>, vector<1x128xf32>,
    %40 = vector.extract_strided_slice %37 {offsets = [1, 0], sizes = [1, 128], strides = [1, 1]} : vector<3x128xf32> to vector<1x128xf32>
    %c8 = arith.constant 8 : index
    %c0_11 = arith.constant 0 : index
    %41 = vector.load %arg3[%c8, %c0_11] : memref<24x128xf32, #tpu.memory_space<vmem>>, vector<1x128xf32>
    tpu.vector_store %arg3[%c8, %c0_11], %40 {strides = array<i32>} : memref<24x128xf32, #tpu.memory_space<vmem>>, vector<1x128xf32>,
    %42 = vector.extract_strided_slice %37 {offsets = [2, 0], sizes = [1, 128], strides = [1, 1]} : vector<3x128xf32> to vector<1x128xf32>
    %c16 = arith.constant 16 : index
    %c0_12 = arith.constant 0 : index
    %43 = vector.load %arg3[%c16, %c0_12] : memref<24x128xf32, #tpu.memory_space<vmem>>, vector<1x128xf32>
    tpu.vector_store %arg3[%c16, %c0_12], %42 {strides = array<i32>} : memref<24x128xf32, #tpu.memory_space<vmem>>, vector<1x128xf32>,
    %44 = vector.extract_strided_slice %1 {offsets = [1, 0], sizes = [1, 128], strides = [1, 1]} : vector<16x128xf32> to vector<1x128xf32>
    %45 = vector.extract_strided_slice %1 {offsets = [9, 0], sizes = [1, 128], strides = [1, 1]} : vector<16x128xf32> to vector<1x128xf32>
    %46 = vector.extract_strided_slice %2 {offsets = [0, 0], sizes = [20, 1], strides = [1, 1]} : vector<20x2xf32> to vector<20x1xf32>
    %47 = vector.broadcast %46 : vector<20x1xf32> to vector<20x128xf32>
    %48 = vector.broadcast %44 : vector<1x128xf32> to vector<20x128xf32>
    %49 = arith.mulf %47, %48 : vector<20x128xf32>
    %50 = vector.extract_strided_slice %2 {offsets = [0, 1], sizes = [20, 1], strides = [1, 1]} : vector<20x2xf32> to vector<20x1xf32>
    %51 = vector.broadcast %50 : vector<20x1xf32> to vector<20x128xf32>
    %52 = vector.broadcast %45 : vector<1x128xf32> to vector<20x128xf32>
    %53 = arith.mulf %51, %52 : vector<20x128xf32>
    %54 = arith.addf %49, %53 : vector<20x128xf32>
    %55 = vector.broadcast %3 : vector<20x1xf32> to vector<20x128xf32>
    %56 = arith.addf %54, %55 : vector<20x128xf32>
    %cst_13 = arith.constant 0.000000e+00 : f32
    %57 = vector.broadcast %cst_13 : f32 to vector<20x128xf32>
    %58 = arith.maximumf %56, %57 : vector<20x128xf32>
    %cst_14 = arith.constant dense<0.000000e+00> : vector<20x128xf32>
    %59 = tpu.matmul %4, %58, %cst_14 {dimension_numbers = #tpu.dot_dimension_numbers<[1], [0], [0], [1], [0, 0, 1, 1], [], []>} : vector<20x20xf32>, vector<20x128xf32>, vector<20x128xf32> -> vector<20x128xf32>
    %60 = vector.broadcast %5 : vector<20x1xf32> to vector<20x128xf32>
    %61 = arith.addf %59, %60 : vector<20x128xf32>
    %cst_15 = arith.constant 0.000000e+00 : f32
    %62 = vector.broadcast %cst_15 : f32 to vector<20x128xf32>
    %63 = arith.maximumf %61, %62 : vector<20x128xf32>
    %cst_16 = arith.constant dense<0.000000e+00> : vector<3x128xf32>
    %64 = tpu.matmul %6, %63, %cst_16 {dimension_numbers = #tpu.dot_dimension_numbers<[1], [0], [0], [1], [0, 0, 1, 1], [], []>} : vector<3x20xf32>, vector<20x128xf32>, vector<3x128xf32> -> vector<3x128xf32>
    %65 = vector.broadcast %7 : vector<3x1xf32> to vector<3x128xf32>
    %66 = arith.addf %64, %65 : vector<3x128xf32>
    %cst_17 = arith.constant 5.000000e-01 : f32
    %67 = vector.broadcast %cst_17 : f32 to vector<3x128xf32>
    %68 = arith.mulf %67, %66 : vector<3x128xf32>
    %69 = math.tanh %68 : vector<3x128xf32>
    %cst_18 = arith.constant 5.000000e-01 : f32
    %70 = vector.broadcast %cst_18 : f32 to vector<3x128xf32>
    %71 = arith.mulf %70, %69 : vector<3x128xf32>
    %cst_19 = arith.constant 5.000000e-01 : f32
    %72 = vector.broadcast %cst_19 : f32 to vector<3x128xf32>
    %73 = arith.addf %71, %72 : vector<3x128xf32>
    %74 = vector.extract_strided_slice %73 {offsets = [0, 0], sizes = [1, 128], strides = [1, 1]} : vector<3x128xf32> to vector<1x128xf32>
    %c1 = arith.constant 1 : index
    %c0_20 = arith.constant 0 : index
    %75 = vector.load %arg3[%c1, %c0_20] : memref<24x128xf32, #tpu.memory_space<vmem>>, vector<1x128xf32>
    tpu.vector_store %arg3[%c1, %c0_20], %74 {strides = array<i32>} : memref<24x128xf32, #tpu.memory_space<vmem>>, vector<1x128xf32>,
    %76 = vector.extract_strided_slice %73 {offsets = [1, 0], sizes = [1, 128], strides = [1, 1]} : vector<3x128xf32> to vector<1x128xf32>
    %c9 = arith.constant 9 : index
    %c0_21 = arith.constant 0 : index
    %77 = vector.load %arg3[%c9, %c0_21] : memref<24x128xf32, #tpu.memory_space<vmem>>, vector<1x128xf32>
    tpu.vector_store %arg3[%c9, %c0_21], %76 {strides = array<i32>} : memref<24x128xf32, #tpu.memory_space<vmem>>, vector<1x128xf32>,
    %78 = vector.extract_strided_slice %73 {offsets = [2, 0], sizes = [1, 128], strides = [1, 1]} : vector<3x128xf32> to vector<1x128xf32>
    %c17 = arith.constant 17 : index
    %c0_22 = arith.constant 0 : index
    %79 = vector.load %arg3[%c17, %c0_22] : memref<24x128xf32, #tpu.memory_space<vmem>>, vector<1x128xf32>
    tpu.vector_store %arg3[%c17, %c0_22], %78 {strides = array<i32>} : memref<24x128xf32, #tpu.memory_space<vmem>>, vector<1x128xf32>,
    %80 = vector.extract_strided_slice %1 {offsets = [2, 0], sizes = [1, 128], strides = [1, 1]} : vector<16x128xf32> to vector<1x128xf32>
    %81 = vector.extract_strided_slice %1 {offsets = [10, 0], sizes = [1, 128], strides = [1, 1]} : vector<16x128xf32> to vector<1x128xf32>
    %82 = vector.extract_strided_slice %2 {offsets = [0, 0], sizes = [20, 1], strides = [1, 1]} : vector<20x2xf32> to vector<20x1xf32>
    %83 = vector.broadcast %82 : vector<20x1xf32> to vector<20x128xf32>
    %84 = vector.broadcast %80 : vector<1x128xf32> to vector<20x128xf32>
    %85 = arith.mulf %83, %84 : vector<20x128xf32>
    %86 = vector.extract_strided_slice %2 {offsets = [0, 1], sizes = [20, 1], strides = [1, 1]} : vector<20x2xf32> to vector<20x1xf32>
    %87 = vector.broadcast %86 : vector<20x1xf32> to vector<20x128xf32>
    %88 = vector.broadcast %81 : vector<1x128xf32> to vector<20x128xf32>
    %89 = arith.mulf %87, %88 : vector<20x128xf32>
    %90 = arith.addf %85, %89 : vector<20x128xf32>
    %91 = vector.broadcast %3 : vector<20x1xf32> to vector<20x128xf32>
    %92 = arith.addf %90, %91 : vector<20x128xf32>
    %cst_23 = arith.constant 0.000000e+00 : f32
    %93 = vector.broadcast %cst_23 : f32 to vector<20x128xf32>
    %94 = arith.maximumf %92, %93 : vector<20x128xf32>
    %cst_24 = arith.constant dense<0.000000e+00> : vector<20x128xf32>
    %95 = tpu.matmul %4, %94, %cst_24 {dimension_numbers = #tpu.dot_dimension_numbers<[1], [0], [0], [1], [0, 0, 1, 1], [], []>} : vector<20x20xf32>, vector<20x128xf32>, vector<20x128xf32> -> vector<20x128xf32>
    %96 = vector.broadcast %5 : vector<20x1xf32> to vector<20x128xf32>
    %97 = arith.addf %95, %96 : vector<20x128xf32>
    %cst_25 = arith.constant 0.000000e+00 : f32
    %98 = vector.broadcast %cst_25 : f32 to vector<20x128xf32>
    %99 = arith.maximumf %97, %98 : vector<20x128xf32>
    %cst_26 = arith.constant dense<0.000000e+00> : vector<3x128xf32>
    %100 = tpu.matmul %6, %99, %cst_26 {dimension_numbers = #tpu.dot_dimension_numbers<[1], [0], [0], [1], [0, 0, 1, 1], [], []>} : vector<3x20xf32>, vector<20x128xf32>, vector<3x128xf32> -> vector<3x128xf32>
    %101 = vector.broadcast %7 : vector<3x1xf32> to vector<3x128xf32>
    %102 = arith.addf %100, %101 : vector<3x128xf32>
    %cst_27 = arith.constant 5.000000e-01 : f32
    %103 = vector.broadcast %cst_27 : f32 to vector<3x128xf32>
    %104 = arith.mulf %103, %102 : vector<3x128xf32>
    %105 = math.tanh %104 : vector<3x128xf32>
    %cst_28 = arith.constant 5.000000e-01 : f32
    %106 = vector.broadcast %cst_28 : f32 to vector<3x128xf32>
    %107 = arith.mulf %106, %105 : vector<3x128xf32>
    %cst_29 = arith.constant 5.000000e-01 : f32
    %108 = vector.broadcast %cst_29 : f32 to vector<3x128xf32>
    %109 = arith.addf %107, %108 : vector<3x128xf32>
    %110 = vector.extract_strided_slice %109 {offsets = [0, 0], sizes = [1, 128], strides = [1, 1]} : vector<3x128xf32> to vector<1x128xf32>
    %c2 = arith.constant 2 : index
    %c0_30 = arith.constant 0 : index
    %111 = vector.load %arg3[%c2, %c0_30] : memref<24x128xf32, #tpu.memory_space<vmem>>, vector<1x128xf32>
    tpu.vector_store %arg3[%c2, %c0_30], %110 {strides = array<i32>} : memref<24x128xf32, #tpu.memory_space<vmem>>, vector<1x128xf32>,
    %112 = vector.extract_strided_slice %109 {offsets = [1, 0], sizes = [1, 128], strides = [1, 1]} : vector<3x128xf32> to vector<1x128xf32>
    %c10 = arith.constant 10 : index
    %c0_31 = arith.constant 0 : index
    %113 = vector.load %arg3[%c10, %c0_31] : memref<24x128xf32, #tpu.memory_space<vmem>>, vector<1x128xf32>
    tpu.vector_store %arg3[%c10, %c0_31], %112 {strides = array<i32>} : memref<24x128xf32, #tpu.memory_space<vmem>>, vector<1x128xf32>,
    %114 = vector.extract_strided_slice %109 {offsets = [2, 0], sizes = [1, 128], strides = [1, 1]} : vector<3x128xf32> to vector<1x128xf32>
    %c18 = arith.constant 18 : index
    %c0_32 = arith.constant 0 : index
    %115 = vector.load %arg3[%c18, %c0_32] : memref<24x128xf32, #tpu.memory_space<vmem>>, vector<1x128xf32>
    tpu.vector_store %arg3[%c18, %c0_32], %114 {strides = array<i32>} : memref<24x128xf32, #tpu.memory_space<vmem>>, vector<1x128xf32>,
    %116 = vector.extract_strided_slice %1 {offsets = [3, 0], sizes = [1, 128], strides = [1, 1]} : vector<16x128xf32> to vector<1x128xf32>
    %117 = vector.extract_strided_slice %1 {offsets = [11, 0], sizes = [1, 128], strides = [1, 1]} : vector<16x128xf32> to vector<1x128xf32>
    %118 = vector.extract_strided_slice %2 {offsets = [0, 0], sizes = [20, 1], strides = [1, 1]} : vector<20x2xf32> to vector<20x1xf32>
    %119 = vector.broadcast %118 : vector<20x1xf32> to vector<20x128xf32>
    %120 = vector.broadcast %116 : vector<1x128xf32> to vector<20x128xf32>
    %121 = arith.mulf %119, %120 : vector<20x128xf32>
    %122 = vector.extract_strided_slice %2 {offsets = [0, 1], sizes = [20, 1], strides = [1, 1]} : vector<20x2xf32> to vector<20x1xf32>
    %123 = vector.broadcast %122 : vector<20x1xf32> to vector<20x128xf32>
    %124 = vector.broadcast %117 : vector<1x128xf32> to vector<20x128xf32>
    %125 = arith.mulf %123, %124 : vector<20x128xf32>
    %126 = arith.addf %121, %125 : vector<20x128xf32>
    %127 = vector.broadcast %3 : vector<20x1xf32> to vector<20x128xf32>
    %128 = arith.addf %126, %127 : vector<20x128xf32>
    %cst_33 = arith.constant 0.000000e+00 : f32
    %129 = vector.broadcast %cst_33 : f32 to vector<20x128xf32>
    %130 = arith.maximumf %128, %129 : vector<20x128xf32>
    %cst_34 = arith.constant dense<0.000000e+00> : vector<20x128xf32>
    %131 = tpu.matmul %4, %130, %cst_34 {dimension_numbers = #tpu.dot_dimension_numbers<[1], [0], [0], [1], [0, 0, 1, 1], [], []>} : vector<20x20xf32>, vector<20x128xf32>, vector<20x128xf32> -> vector<20x128xf32>
    %132 = vector.broadcast %5 : vector<20x1xf32> to vector<20x128xf32>
    %133 = arith.addf %131, %132 : vector<20x128xf32>
    %cst_35 = arith.constant 0.000000e+00 : f32
    %134 = vector.broadcast %cst_35 : f32 to vector<20x128xf32>
    %135 = arith.maximumf %133, %134 : vector<20x128xf32>
    %cst_36 = arith.constant dense<0.000000e+00> : vector<3x128xf32>
    %136 = tpu.matmul %6, %135, %cst_36 {dimension_numbers = #tpu.dot_dimension_numbers<[1], [0], [0], [1], [0, 0, 1, 1], [], []>} : vector<3x20xf32>, vector<20x128xf32>, vector<3x128xf32> -> vector<3x128xf32>
    %137 = vector.broadcast %7 : vector<3x1xf32> to vector<3x128xf32>
    %138 = arith.addf %136, %137 : vector<3x128xf32>
    %cst_37 = arith.constant 5.000000e-01 : f32
    %139 = vector.broadcast %cst_37 : f32 to vector<3x128xf32>
    %140 = arith.mulf %139, %138 : vector<3x128xf32>
    %141 = math.tanh %140 : vector<3x128xf32>
    %cst_38 = arith.constant 5.000000e-01 : f32
    %142 = vector.broadcast %cst_38 : f32 to vector<3x128xf32>
    %143 = arith.mulf %142, %141 : vector<3x128xf32>
    %cst_39 = arith.constant 5.000000e-01 : f32
    %144 = vector.broadcast %cst_39 : f32 to vector<3x128xf32>
    %145 = arith.addf %143, %144 : vector<3x128xf32>
    %146 = vector.extract_strided_slice %145 {offsets = [0, 0], sizes = [1, 128], strides = [1, 1]} : vector<3x128xf32> to vector<1x128xf32>
    %c3 = arith.constant 3 : index
    %c0_40 = arith.constant 0 : index
    %147 = vector.load %arg3[%c3, %c0_40] : memref<24x128xf32, #tpu.memory_space<vmem>>, vector<1x128xf32>
    tpu.vector_store %arg3[%c3, %c0_40], %146 {strides = array<i32>} : memref<24x128xf32, #tpu.memory_space<vmem>>, vector<1x128xf32>,
    %148 = vector.extract_strided_slice %145 {offsets = [1, 0], sizes = [1, 128], strides = [1, 1]} : vector<3x128xf32> to vector<1x128xf32>
    %c11 = arith.constant 11 : index
    %c0_41 = arith.constant 0 : index
    %149 = vector.load %arg3[%c11, %c0_41] : memref<24x128xf32, #tpu.memory_space<vmem>>, vector<1x128xf32>
    tpu.vector_store %arg3[%c11, %c0_41], %148 {strides = array<i32>} : memref<24x128xf32, #tpu.memory_space<vmem>>, vector<1x128xf32>,
    %150 = vector.extract_strided_slice %145 {offsets = [2, 0], sizes = [1, 128], strides = [1, 1]} : vector<3x128xf32> to vector<1x128xf32>
    %c19 = arith.constant 19 : index
    %c0_42 = arith.constant 0 : index
    %151 = vector.load %arg3[%c19, %c0_42] : memref<24x128xf32, #tpu.memory_space<vmem>>, vector<1x128xf32>
    tpu.vector_store %arg3[%c19, %c0_42], %150 {strides = array<i32>} : memref<24x128xf32, #tpu.memory_space<vmem>>, vector<1x128xf32>,
    %152 = vector.extract_strided_slice %1 {offsets = [4, 0], sizes = [1, 128], strides = [1, 1]} : vector<16x128xf32> to vector<1x128xf32>
    %153 = vector.extract_strided_slice %1 {offsets = [12, 0], sizes = [1, 128], strides = [1, 1]} : vector<16x128xf32> to vector<1x128xf32>
    %154 = vector.extract_strided_slice %2 {offsets = [0, 0], sizes = [20, 1], strides = [1, 1]} : vector<20x2xf32> to vector<20x1xf32>
    %155 = vector.broadcast %154 : vector<20x1xf32> to vector<20x128xf32>
    %156 = vector.broadcast %152 : vector<1x128xf32> to vector<20x128xf32>
    %157 = arith.mulf %155, %156 : vector<20x128xf32>
    %158 = vector.extract_strided_slice %2 {offsets = [0, 1], sizes = [20, 1], strides = [1, 1]} : vector<20x2xf32> to vector<20x1xf32>
    %159 = vector.broadcast %158 : vector<20x1xf32> to vector<20x128xf32>
    %160 = vector.broadcast %153 : vector<1x128xf32> to vector<20x128xf32>
    %161 = arith.mulf %159, %160 : vector<20x128xf32>
    %162 = arith.addf %157, %161 : vector<20x128xf32>
    %163 = vector.broadcast %3 : vector<20x1xf32> to vector<20x128xf32>
    %164 = arith.addf %162, %163 : vector<20x128xf32>
    %cst_43 = arith.constant 0.000000e+00 : f32
    %165 = vector.broadcast %cst_43 : f32 to vector<20x128xf32>
    %166 = arith.maximumf %164, %165 : vector<20x128xf32>
    %cst_44 = arith.constant dense<0.000000e+00> : vector<20x128xf32>
    %167 = tpu.matmul %4, %166, %cst_44 {dimension_numbers = #tpu.dot_dimension_numbers<[1], [0], [0], [1], [0, 0, 1, 1], [], []>} : vector<20x20xf32>, vector<20x128xf32>, vector<20x128xf32> -> vector<20x128xf32>
    %168 = vector.broadcast %5 : vector<20x1xf32> to vector<20x128xf32>
    %169 = arith.addf %167, %168 : vector<20x128xf32>
    %cst_45 = arith.constant 0.000000e+00 : f32
    %170 = vector.broadcast %cst_45 : f32 to vector<20x128xf32>
    %171 = arith.maximumf %169, %170 : vector<20x128xf32>
    %cst_46 = arith.constant dense<0.000000e+00> : vector<3x128xf32>
    %172 = tpu.matmul %6, %171, %cst_46 {dimension_numbers = #tpu.dot_dimension_numbers<[1], [0], [0], [1], [0, 0, 1, 1], [], []>} : vector<3x20xf32>, vector<20x128xf32>, vector<3x128xf32> -> vector<3x128xf32>
    %173 = vector.broadcast %7 : vector<3x1xf32> to vector<3x128xf32>
    %174 = arith.addf %172, %173 : vector<3x128xf32>
    %cst_47 = arith.constant 5.000000e-01 : f32
    %175 = vector.broadcast %cst_47 : f32 to vector<3x128xf32>
    %176 = arith.mulf %175, %174 : vector<3x128xf32>
    %177 = math.tanh %176 : vector<3x128xf32>
    %cst_48 = arith.constant 5.000000e-01 : f32
    %178 = vector.broadcast %cst_48 : f32 to vector<3x128xf32>
    %179 = arith.mulf %178, %177 : vector<3x128xf32>
    %cst_49 = arith.constant 5.000000e-01 : f32
    %180 = vector.broadcast %cst_49 : f32 to vector<3x128xf32>
    %181 = arith.addf %179, %180 : vector<3x128xf32>
    %182 = vector.extract_strided_slice %181 {offsets = [0, 0], sizes = [1, 128], strides = [1, 1]} : vector<3x128xf32> to vector<1x128xf32>
    %c4 = arith.constant 4 : index
    %c0_50 = arith.constant 0 : index
    %183 = vector.load %arg3[%c4, %c0_50] : memref<24x128xf32, #tpu.memory_space<vmem>>, vector<1x128xf32>
    tpu.vector_store %arg3[%c4, %c0_50], %182 {strides = array<i32>} : memref<24x128xf32, #tpu.memory_space<vmem>>, vector<1x128xf32>,
    %184 = vector.extract_strided_slice %181 {offsets = [1, 0], sizes = [1, 128], strides = [1, 1]} : vector<3x128xf32> to vector<1x128xf32>
    %c12 = arith.constant 12 : index
    %c0_51 = arith.constant 0 : index
    %185 = vector.load %arg3[%c12, %c0_51] : memref<24x128xf32, #tpu.memory_space<vmem>>, vector<1x128xf32>
    tpu.vector_store %arg3[%c12, %c0_51], %184 {strides = array<i32>} : memref<24x128xf32, #tpu.memory_space<vmem>>, vector<1x128xf32>,
    %186 = vector.extract_strided_slice %181 {offsets = [2, 0], sizes = [1, 128], strides = [1, 1]} : vector<3x128xf32> to vector<1x128xf32>
    %c20 = arith.constant 20 : index
    %c0_52 = arith.constant 0 : index
    %187 = vector.load %arg3[%c20, %c0_52] : memref<24x128xf32, #tpu.memory_space<vmem>>, vector<1x128xf32>
    tpu.vector_store %arg3[%c20, %c0_52], %186 {strides = array<i32>} : memref<24x128xf32, #tpu.memory_space<vmem>>, vector<1x128xf32>,
    %188 = vector.extract_strided_slice %1 {offsets = [5, 0], sizes = [1, 128], strides = [1, 1]} : vector<16x128xf32> to vector<1x128xf32>
    %189 = vector.extract_strided_slice %1 {offsets = [13, 0], sizes = [1, 128], strides = [1, 1]} : vector<16x128xf32> to vector<1x128xf32>
    %190 = vector.extract_strided_slice %2 {offsets = [0, 0], sizes = [20, 1], strides = [1, 1]} : vector<20x2xf32> to vector<20x1xf32>
    %191 = vector.broadcast %190 : vector<20x1xf32> to vector<20x128xf32>
    %192 = vector.broadcast %188 : vector<1x128xf32> to vector<20x128xf32>
    %193 = arith.mulf %191, %192 : vector<20x128xf32>
    %194 = vector.extract_strided_slice %2 {offsets = [0, 1], sizes = [20, 1], strides = [1, 1]} : vector<20x2xf32> to vector<20x1xf32>
    %195 = vector.broadcast %194 : vector<20x1xf32> to vector<20x128xf32>
    %196 = vector.broadcast %189 : vector<1x128xf32> to vector<20x128xf32>
    %197 = arith.mulf %195, %196 : vector<20x128xf32>
    %198 = arith.addf %193, %197 : vector<20x128xf32>
    %199 = vector.broadcast %3 : vector<20x1xf32> to vector<20x128xf32>
    %200 = arith.addf %198, %199 : vector<20x128xf32>
    %cst_53 = arith.constant 0.000000e+00 : f32
    %201 = vector.broadcast %cst_53 : f32 to vector<20x128xf32>
    %202 = arith.maximumf %200, %201 : vector<20x128xf32>
    %cst_54 = arith.constant dense<0.000000e+00> : vector<20x128xf32>
    %203 = tpu.matmul %4, %202, %cst_54 {dimension_numbers = #tpu.dot_dimension_numbers<[1], [0], [0], [1], [0, 0, 1, 1], [], []>} : vector<20x20xf32>, vector<20x128xf32>, vector<20x128xf32> -> vector<20x128xf32>
    %204 = vector.broadcast %5 : vector<20x1xf32> to vector<20x128xf32>
    %205 = arith.addf %203, %204 : vector<20x128xf32>
    %cst_55 = arith.constant 0.000000e+00 : f32
    %206 = vector.broadcast %cst_55 : f32 to vector<20x128xf32>
    %207 = arith.maximumf %205, %206 : vector<20x128xf32>
    %cst_56 = arith.constant dense<0.000000e+00> : vector<3x128xf32>
    %208 = tpu.matmul %6, %207, %cst_56 {dimension_numbers = #tpu.dot_dimension_numbers<[1], [0], [0], [1], [0, 0, 1, 1], [], []>} : vector<3x20xf32>, vector<20x128xf32>, vector<3x128xf32> -> vector<3x128xf32>
    %209 = vector.broadcast %7 : vector<3x1xf32> to vector<3x128xf32>
    %210 = arith.addf %208, %209 : vector<3x128xf32>
    %cst_57 = arith.constant 5.000000e-01 : f32
    %211 = vector.broadcast %cst_57 : f32 to vector<3x128xf32>
    %212 = arith.mulf %211, %210 : vector<3x128xf32>
    %213 = math.tanh %212 : vector<3x128xf32>
    %cst_58 = arith.constant 5.000000e-01 : f32
    %214 = vector.broadcast %cst_58 : f32 to vector<3x128xf32>
    %215 = arith.mulf %214, %213 : vector<3x128xf32>
    %cst_59 = arith.constant 5.000000e-01 : f32
    %216 = vector.broadcast %cst_59 : f32 to vector<3x128xf32>
    %217 = arith.addf %215, %216 : vector<3x128xf32>
    %218 = vector.extract_strided_slice %217 {offsets = [0, 0], sizes = [1, 128], strides = [1, 1]} : vector<3x128xf32> to vector<1x128xf32>
    %c5 = arith.constant 5 : index
    %c0_60 = arith.constant 0 : index
    %219 = vector.load %arg3[%c5, %c0_60] : memref<24x128xf32, #tpu.memory_space<vmem>>, vector<1x128xf32>
    tpu.vector_store %arg3[%c5, %c0_60], %218 {strides = array<i32>} : memref<24x128xf32, #tpu.memory_space<vmem>>, vector<1x128xf32>,
    %220 = vector.extract_strided_slice %217 {offsets = [1, 0], sizes = [1, 128], strides = [1, 1]} : vector<3x128xf32> to vector<1x128xf32>
    %c13 = arith.constant 13 : index
    %c0_61 = arith.constant 0 : index
    %221 = vector.load %arg3[%c13, %c0_61] : memref<24x128xf32, #tpu.memory_space<vmem>>, vector<1x128xf32>
    tpu.vector_store %arg3[%c13, %c0_61], %220 {strides = array<i32>} : memref<24x128xf32, #tpu.memory_space<vmem>>, vector<1x128xf32>,
    %222 = vector.extract_strided_slice %217 {offsets = [2, 0], sizes = [1, 128], strides = [1, 1]} : vector<3x128xf32> to vector<1x128xf32>
    %c21 = arith.constant 21 : index
    %c0_62 = arith.constant 0 : index
    %223 = vector.load %arg3[%c21, %c0_62] : memref<24x128xf32, #tpu.memory_space<vmem>>, vector<1x128xf32>
    tpu.vector_store %arg3[%c21, %c0_62], %222 {strides = array<i32>} : memref<24x128xf32, #tpu.memory_space<vmem>>, vector<1x128xf32>,
    %224 = vector.extract_strided_slice %1 {offsets = [6, 0], sizes = [1, 128], strides = [1, 1]} : vector<16x128xf32> to vector<1x128xf32>
    %225 = vector.extract_strided_slice %1 {offsets = [14, 0], sizes = [1, 128], strides = [1, 1]} : vector<16x128xf32> to vector<1x128xf32>
    %226 = vector.extract_strided_slice %2 {offsets = [0, 0], sizes = [20, 1], strides = [1, 1]} : vector<20x2xf32> to vector<20x1xf32>
    %227 = vector.broadcast %226 : vector<20x1xf32> to vector<20x128xf32>
    %228 = vector.broadcast %224 : vector<1x128xf32> to vector<20x128xf32>
    %229 = arith.mulf %227, %228 : vector<20x128xf32>
    %230 = vector.extract_strided_slice %2 {offsets = [0, 1], sizes = [20, 1], strides = [1, 1]} : vector<20x2xf32> to vector<20x1xf32>
    %231 = vector.broadcast %230 : vector<20x1xf32> to vector<20x128xf32>
    %232 = vector.broadcast %225 : vector<1x128xf32> to vector<20x128xf32>
    %233 = arith.mulf %231, %232 : vector<20x128xf32>
    %234 = arith.addf %229, %233 : vector<20x128xf32>
    %235 = vector.broadcast %3 : vector<20x1xf32> to vector<20x128xf32>
    %236 = arith.addf %234, %235 : vector<20x128xf32>
    %cst_63 = arith.constant 0.000000e+00 : f32
    %237 = vector.broadcast %cst_63 : f32 to vector<20x128xf32>
    %238 = arith.maximumf %236, %237 : vector<20x128xf32>
    %cst_64 = arith.constant dense<0.000000e+00> : vector<20x128xf32>
    %239 = tpu.matmul %4, %238, %cst_64 {dimension_numbers = #tpu.dot_dimension_numbers<[1], [0], [0], [1], [0, 0, 1, 1], [], []>} : vector<20x20xf32>, vector<20x128xf32>, vector<20x128xf32> -> vector<20x128xf32>
    %240 = vector.broadcast %5 : vector<20x1xf32> to vector<20x128xf32>
    %241 = arith.addf %239, %240 : vector<20x128xf32>
    %cst_65 = arith.constant 0.000000e+00 : f32
    %242 = vector.broadcast %cst_65 : f32 to vector<20x128xf32>
    %243 = arith.maximumf %241, %242 : vector<20x128xf32>
    %cst_66 = arith.constant dense<0.000000e+00> : vector<3x128xf32>
    %244 = tpu.matmul %6, %243, %cst_66 {dimension_numbers = #tpu.dot_dimension_numbers<[1], [0], [0], [1], [0, 0, 1, 1], [], []>} : vector<3x20xf32>, vector<20x128xf32>, vector<3x128xf32> -> vector<3x128xf32>
    %245 = vector.broadcast %7 : vector<3x1xf32> to vector<3x128xf32>
    %246 = arith.addf %244, %245 : vector<3x128xf32>
    %cst_67 = arith.constant 5.000000e-01 : f32
    %247 = vector.broadcast %cst_67 : f32 to vector<3x128xf32>
    %248 = arith.mulf %247, %246 : vector<3x128xf32>
    %249 = math.tanh %248 : vector<3x128xf32>
    %cst_68 = arith.constant 5.000000e-01 : f32
    %250 = vector.broadcast %cst_68 : f32 to vector<3x128xf32>
    %251 = arith.mulf %250, %249 : vector<3x128xf32>
    %cst_69 = arith.constant 5.000000e-01 : f32
    %252 = vector.broadcast %cst_69 : f32 to vector<3x128xf32>
    %253 = arith.addf %251, %252 : vector<3x128xf32>
    %254 = vector.extract_strided_slice %253 {offsets = [0, 0], sizes = [1, 128], strides = [1, 1]} : vector<3x128xf32> to vector<1x128xf32>
    %c6 = arith.constant 6 : index
    %c0_70 = arith.constant 0 : index
    %255 = vector.load %arg3[%c6, %c0_70] : memref<24x128xf32, #tpu.memory_space<vmem>>, vector<1x128xf32>
    tpu.vector_store %arg3[%c6, %c0_70], %254 {strides = array<i32>} : memref<24x128xf32, #tpu.memory_space<vmem>>, vector<1x128xf32>,
    %256 = vector.extract_strided_slice %253 {offsets = [1, 0], sizes = [1, 128], strides = [1, 1]} : vector<3x128xf32> to vector<1x128xf32>
    %c14 = arith.constant 14 : index
    %c0_71 = arith.constant 0 : index
    %257 = vector.load %arg3[%c14, %c0_71] : memref<24x128xf32, #tpu.memory_space<vmem>>, vector<1x128xf32>
    tpu.vector_store %arg3[%c14, %c0_71], %256 {strides = array<i32>} : memref<24x128xf32, #tpu.memory_space<vmem>>, vector<1x128xf32>,
    %258 = vector.extract_strided_slice %253 {offsets = [2, 0], sizes = [1, 128], strides = [1, 1]} : vector<3x128xf32> to vector<1x128xf32>
    %c22 = arith.constant 22 : index
    %c0_72 = arith.constant 0 : index
    %259 = vector.load %arg3[%c22, %c0_72] : memref<24x128xf32, #tpu.memory_space<vmem>>, vector<1x128xf32>
    tpu.vector_store %arg3[%c22, %c0_72], %258 {strides = array<i32>} : memref<24x128xf32, #tpu.memory_space<vmem>>, vector<1x128xf32>,
    %260 = vector.extract_strided_slice %1 {offsets = [7, 0], sizes = [1, 128], strides = [1, 1]} : vector<16x128xf32> to vector<1x128xf32>
    %261 = vector.extract_strided_slice %1 {offsets = [15, 0], sizes = [1, 128], strides = [1, 1]} : vector<16x128xf32> to vector<1x128xf32>
    %262 = vector.extract_strided_slice %2 {offsets = [0, 0], sizes = [20, 1], strides = [1, 1]} : vector<20x2xf32> to vector<20x1xf32>
    %263 = vector.broadcast %262 : vector<20x1xf32> to vector<20x128xf32>
    %264 = vector.broadcast %260 : vector<1x128xf32> to vector<20x128xf32>
    %265 = arith.mulf %263, %264 : vector<20x128xf32>
    %266 = vector.extract_strided_slice %2 {offsets = [0, 1], sizes = [20, 1], strides = [1, 1]} : vector<20x2xf32> to vector<20x1xf32>
    %267 = vector.broadcast %266 : vector<20x1xf32> to vector<20x128xf32>
    %268 = vector.broadcast %261 : vector<1x128xf32> to vector<20x128xf32>
    %269 = arith.mulf %267, %268 : vector<20x128xf32>
    %270 = arith.addf %265, %269 : vector<20x128xf32>
    %271 = vector.broadcast %3 : vector<20x1xf32> to vector<20x128xf32>
    %272 = arith.addf %270, %271 : vector<20x128xf32>
    %cst_73 = arith.constant 0.000000e+00 : f32
    %273 = vector.broadcast %cst_73 : f32 to vector<20x128xf32>
    %274 = arith.maximumf %272, %273 : vector<20x128xf32>
    %cst_74 = arith.constant dense<0.000000e+00> : vector<20x128xf32>
    %275 = tpu.matmul %4, %274, %cst_74 {dimension_numbers = #tpu.dot_dimension_numbers<[1], [0], [0], [1], [0, 0, 1, 1], [], []>} : vector<20x20xf32>, vector<20x128xf32>, vector<20x128xf32> -> vector<20x128xf32>
    %276 = vector.broadcast %5 : vector<20x1xf32> to vector<20x128xf32>
    %277 = arith.addf %275, %276 : vector<20x128xf32>
    %cst_75 = arith.constant 0.000000e+00 : f32
    %278 = vector.broadcast %cst_75 : f32 to vector<20x128xf32>
    %279 = arith.maximumf %277, %278 : vector<20x128xf32>
    %cst_76 = arith.constant dense<0.000000e+00> : vector<3x128xf32>
    %280 = tpu.matmul %6, %279, %cst_76 {dimension_numbers = #tpu.dot_dimension_numbers<[1], [0], [0], [1], [0, 0, 1, 1], [], []>} : vector<3x20xf32>, vector<20x128xf32>, vector<3x128xf32> -> vector<3x128xf32>
    %281 = vector.broadcast %7 : vector<3x1xf32> to vector<3x128xf32>
    %282 = arith.addf %280, %281 : vector<3x128xf32>
    %cst_77 = arith.constant 5.000000e-01 : f32
    %283 = vector.broadcast %cst_77 : f32 to vector<3x128xf32>
    %284 = arith.mulf %283, %282 : vector<3x128xf32>
    %285 = math.tanh %284 : vector<3x128xf32>
    %cst_78 = arith.constant 5.000000e-01 : f32
    %286 = vector.broadcast %cst_78 : f32 to vector<3x128xf32>
    %287 = arith.mulf %286, %285 : vector<3x128xf32>
    %cst_79 = arith.constant 5.000000e-01 : f32
    %288 = vector.broadcast %cst_79 : f32 to vector<3x128xf32>
    %289 = arith.addf %287, %288 : vector<3x128xf32>
    %290 = vector.extract_strided_slice %289 {offsets = [0, 0], sizes = [1, 128], strides = [1, 1]} : vector<3x128xf32> to vector<1x128xf32>
    %c7 = arith.constant 7 : index
    %c0_80 = arith.constant 0 : index
    %291 = vector.load %arg3[%c7, %c0_80] : memref<24x128xf32, #tpu.memory_space<vmem>>, vector<1x128xf32>
    tpu.vector_store %arg3[%c7, %c0_80], %290 {strides = array<i32>} : memref<24x128xf32, #tpu.memory_space<vmem>>, vector<1x128xf32>,
    %292 = vector.extract_strided_slice %289 {offsets = [1, 0], sizes = [1, 128], strides = [1, 1]} : vector<3x128xf32> to vector<1x128xf32>
    %c15 = arith.constant 15 : index
    %c0_81 = arith.constant 0 : index
    %293 = vector.load %arg3[%c15, %c0_81] : memref<24x128xf32, #tpu.memory_space<vmem>>, vector<1x128xf32>
    tpu.vector_store %arg3[%c15, %c0_81], %292 {strides = array<i32>} : memref<24x128xf32, #tpu.memory_space<vmem>>, vector<1x128xf32>,
    %294 = vector.extract_strided_slice %289 {offsets = [2, 0], sizes = [1, 128], strides = [1, 1]} : vector<3x128xf32> to vector<1x128xf32>
    %c23 = arith.constant 23 : index
    %c0_82 = arith.constant 0 : index
    %295 = vector.load %arg3[%c23, %c0_82] : memref<24x128xf32, #tpu.memory_space<vmem>>, vector<1x128xf32>
    tpu.vector_store %arg3[%c23, %c0_82], %294 {strides = array<i32>} : memref<24x128xf32, #tpu.memory_space<vmem>>, vector<1x128xf32>,
    return
  }
  func.func @transform_0(%arg0: i32) -> (i32, i32) {
    %c0_i32 = arith.constant 0 : i32
    %c0_i32_0 = arith.constant 0 : i32
    %c0_i32_1 = arith.constant 0 : i32
    return %c0_i32, %c0_i32_0 : i32, i32
  }
  func.func @transform_1(%arg0: i32) -> (i32, i32) {
    %c0_i32 = arith.constant 0 : i32
    %c0_i32_0 = arith.constant 0 : i32
    return %c0_i32, %arg0 : i32, i32
  }
  func.func @transform_2(%arg0: i32) -> (i32, i32) {
    %c0_i32 = arith.constant 0 : i32
    %c0_i32_0 = arith.constant 0 : i32
    return %c0_i32, %arg0 : i32, i32
  }
}

</mosaic_0001>

<bundles_post_ra>
// kernel: model1_forward.1
= control target key start
LH: loop header
LB: loop body
LE: loop exit
PB: predicated region body
PF: predicated region fallthrough
CT: control target
= control target key end

     0   :  { %v35_v0 = vlaneseq  ;;  %v2005_v1 = vmov 1   ;;  %v2006_v2 = vmov 0   ;;  %v2007_v23 = vmov 2   ;;  %s2559_s0 = inlined_call_operand.vmem [shape: f32[56,24], index: 0, kind: input, shape index: {}]   ;;  %s2560_s1 = inlined_call_operand.vmem [shape: f32[16,128], index: 1, kind: input, shape index: {}]   ;;  %s2561_s2 = inlined_call_operand.vmem [shape: f32[24,128], index: 2, kind: output, shape index: {}]  }
   0x1   :  { %1981 = vset.pattern.permute.xlu1 %v2005_v1  ;;  %1980 = vset.pattern.permute.xlu0 %v2006_v2  ;;  %v11_v3 = vld [vmem:[%s2559_s0] sm:$0xff]  ;;  %v12_v5 = vld [vmem:[%s2559_s0 + $0x8] sm:$0xff]  ;;  %v13_v26 = vld [vmem:[%s2559_s0 + $0x10] sm:$0xff]  ;;  %v2008_v27 = vmov 0.0|0.0   ;;  %vm2009_vm0 = vmmov 0   ;;  %v2010_v31 = vmov 0.0  }
   0x2   :  { %43 = vperm.xlu1 %1981, %v11_v3   ;;  %22 = vperm.xlu0 %1980, %v11_v3   ;;  %v36_v4 = vshrl.u32 %v35_v0, 7  ;;  %v18_v6 = vld [vmem:[%s2560_s1] sm:$0xff]  ;;  %v19_v7 = vld [vmem:[%s2560_s1 + $0x8] sm:$0xff]  ;;  %v2079_v33 = vld [vmem:[%s2559_s0 + $0x18] sm:$0xff]  ;;  %v2011_v35 = vmov 20   ;;  %vm104_vm1 = vcmask 1043456  }
   0x3   :  { %1925 = vmatprep.subr.bf16.mxu0 %v2008_v27  ;;  %1928 = vmatprep.subr.bf16.mxu1 %v2008_v27  ;;  %v2084_v34 = vld [vmem:[%s2559_s0 + $0x20] sm:$0xff]  ;;  %v2091_v36 = vld [vmem:[%s2559_s0 + $0x28] sm:$0xff]  ;;  %v2097_v37 = vld [vmem:[%s2559_s0 + $0x30] sm:$0xff]  ;;  %vm97_vm2 = vcmask 162816  }
   0x4   :  { %v280_v8 = vsub.s32 1, %v36_v4  ;;  %v469_v9 = vsub.s32 2, %v36_v4  ;;  %v658_v10 = vsub.s32 3, %v36_v4  ;;  %v847_v11 = vsub.s32 4, %v36_v4  ;;  %1739 = vmatprep.mubr.msk.f32.mxu0 %vm2009_vm0, %v2010_v31  ;;  %1754 = vmatprep.mubr.msk.f32.mxu1 %vm2009_vm0, %v2010_v31 }
   0x5   :  { %v1036_v12 = vsub.s32 5, %v36_v4  ;;  %v1225_v24 = vsub.s32 6, %v36_v4  ;;  %v1414_v29 = vsub.s32 7, %v36_v4  ;;  %v37_v38 = vsub.s32 0, %v36_v4 }
   0x6   :  { %47 = vperm.xlu1 %1981, %v12_v5   ;;  %27 = vperm.xlu0 %1980, %v12_v5   ;;  %v2039_v13 = vrot.slane %v18_v6, %v280_v8  ;;  %v2041_v14 = vrot.slane %v19_v7, %v280_v8  ;;  %v2043_v15 = vrot.slane %v18_v6, %v469_v9 }
   0x7   :  { %v2045_v16 = vrot.slane %v19_v7, %v469_v9  ;;  %v2047_v17 = vrot.slane %v18_v6, %v658_v10  ;;  %v2049_v18 = vrot.slane %v19_v7, %v658_v10  ;;  %v2051_v19 = vrot.slane %v18_v6, %v847_v11 }
   0x8   :  { %v2053_v20 = vrot.slane %v19_v7, %v847_v11  ;;  %v2055_v21 = vrot.slane %v18_v6, %v1036_v12  ;;  %v2057_v22 = vrot.slane %v19_v7, %v1036_v12  ;;  %v2059_v25 = vrot.slane %v18_v6, %v1225_v24 }
   0x9   :  { %v2066_v28 = vrot.slane %v19_v7, %v1225_v24  ;;  %v2068_v30 = vrot.slane %v18_v6, %v1414_v29  ;;  %v2074_v32 = vrot.slane %v19_v7, %v1414_v29  ;;  %v2100_v39 = vrot.slane %v18_v6, %v37_v38 }
   0xa   :  { %1983 = vset.pattern.permute.xlu1 %v2007_v23  ;;  %1982 = vset.pattern.permute.xlu0 %v2007_v23  ;;  %v2102_v40 = vrot.slane %v19_v7, %v37_v38 }
   0xb   :  { %69 = vperm.xlu1 %1983, %v12_v5   ;;  %65 = vperm.xlu0 %1982, %v11_v3  }
   0xf   :  { %1984 = vset.pattern.permute.xlu1 %v2006_v2  ;;  %1985 = vset.pattern.permute.xlu0 %v2005_v1 }
  0x10   :  { %32 = vperm.xlu1 %1984, %v13_v26   ;;  %51 = vperm.xlu0 %1985, %v13_v26  }
  0x14   :  { %1986 = vset.pattern.permute.xlu1 %v2007_v23  ;;  %1988 = vset.pattern.permute.xlu0 %v2011_v35 }
  0x15   :  { %73 = vperm.xlu1 %1986, %v13_v26   ;;  %89 = vperm.xlu0 %1988, %v2084_v34  }
  0x19   :  { %1987 = vset.pattern.permute.xlu1 %v2011_v35 }
  0x1a   :  { %84 = vperm.xlu1 %1987, %v2079_v33  }
  0x1e   :  { %94 = vperm.xlu1 %1987, %v2091_v36  }
  0x22   :  { %193 = vperm.xlu1 %1987, %v2097_v37  }
  0x81   :  { %v2104_v41 = vpop.permute.xlu1 %43  ;;  %v2106_v42 = vpop.permute.xlu0 %22 }
  0x82   :  { %v39_v43 = vmul.f32 %v2100_v39, %v2106_v42  ;;  %v58_v44 = vmul.f32 %v2102_v40, %v2104_v41  ;;  %v282_v45 = vmul.f32 %v2039_v13, %v2106_v42  ;;  %v289_v46 = vmul.f32 %v2041_v14, %v2104_v41 }
  0x83   :  { %v471_v47 = vmul.f32 %v2043_v15, %v2106_v42  ;;  %v478_v48 = vmul.f32 %v2045_v16, %v2104_v41  ;;  %v660_v49 = vmul.f32 %v2047_v17, %v2106_v42  ;;  %v667_v50 = vmul.f32 %v2049_v18, %v2104_v41 }
  0x84   :  { %v61_v51 = vadd.f32 %v58_v44, %v39_v43  ;;  %v292_v52 = vadd.f32 %v289_v46, %v282_v45  ;;  %v849_v53 = vmul.f32 %v2051_v19, %v2106_v42  ;;  %v856_v54 = vmul.f32 %v2053_v20, %v2104_v41 }
  0x85   :  { %v2128_v55 = vpop.permute.xlu1 %47  ;;  %v2130_v56 = vpop.permute.xlu0 %27  ;;  %v481_v57 = vadd.f32 %v478_v48, %v471_v47  ;;  %v670_v58 = vadd.f32 %v667_v50, %v660_v49  ;;  %v1038_v59 = vmul.f32 %v2055_v21, %v2106_v42  ;;  %v1045_v60 = vmul.f32 %v2057_v22, %v2104_v41 }
  0x86   :  { %v40_v61 = vmul.f32 %v2100_v39, %v2130_v56  ;;  %v59_v62 = vmul.f32 %v2102_v40, %v2128_v55  ;;  %v283_v63 = vmul.f32 %v2039_v13, %v2130_v56  ;;  %v290_v0 = vmul.f32 %v2041_v14, %v2128_v55 }
  0x87   :  { %v472_v1 = vmul.f32 %v2043_v15, %v2130_v56  ;;  %v479_v2 = vmul.f32 %v2045_v16, %v2128_v55  ;;  %v661_v3 = vmul.f32 %v2047_v17, %v2130_v56  ;;  %v668_v4 = vmul.f32 %v2049_v18, %v2128_v55 }
  0x88   :  { %v62_v5 = vadd.f32 %v59_v62, %v40_v61  ;;  %v293_v6 = vadd.f32 %v290_v0, %v283_v63  ;;  %v850_v7 = vmul.f32 %v2051_v19, %v2130_v56  ;;  %v857_v8 = vmul.f32 %v2053_v20, %v2128_v55 }
  0x89   :  { %v482_v9 = vadd.f32 %v479_v2, %v472_v1  ;;  %v671_v10 = vadd.f32 %v668_v4, %v661_v3  ;;  %v859_v11 = vadd.f32 %v856_v54, %v849_v53  ;;  %v1039_v12 = vmul.f32 %v2055_v21, %v2130_v56 }
  0x8a   :  { %v2158_v23 = vpop.permute.xlu1 %69  ;;  %v2160_v24 = vpop.permute.xlu0 %65  ;;  %v860_v26 = vadd.f32 %v857_v8, %v850_v7  ;;  %v1046_v29 = vmul.f32 %v2057_v22, %v2128_v55  ;;  %v1048_v35 = vadd.f32 %v1045_v60, %v1038_v59  ;;  %v2166_v38 = vmul.f32 %v2059_v25, %v2106_v42 }
  0x8b   :  { %v76_v43 = vadd.f32 %v2160_v24, %v61_v51  ;;  %v77_v44 = vadd.f32 %v2158_v23, %v62_v5  ;;  %v295_v45 = vadd.f32 %v292_v52, %v2160_v24  ;;  %v296_v46 = vadd.f32 %v293_v6, %v2158_v23 }
  0x8c   :  { %v484_v47 = vadd.f32 %v481_v57, %v2160_v24  ;;  %v485_v48 = vadd.f32 %v482_v9, %v2158_v23  ;;  %v673_v49 = vadd.f32 %v670_v58, %v2160_v24  ;;  %v674_v50 = vadd.f32 %v671_v10, %v2158_v23 }
  0x8d   :  { %v79_v53 = vmax.f32 %v76_v43, 0.0  ;;  %v80_v54 = vmax.f32 %v77_v44, 0.0  ;;  %v298_v59 = vmax.f32 %v295_v45, 0.0  ;;  %v299_v60 = vmax.f32 %v296_v46, 0.0 }
  0x8e   :  { %v487_v51 = vmax.f32 %v484_v47, 0.0  ;;  %v488_v61 = vmax.f32 %v485_v48, 0.0  ;;  %v676_v62 = vmax.f32 %v673_v49, 0.0  ;;  %v677_v63 = vmax.f32 %v674_v50, 0.0 }
  0x8f   :  { %v2176_v52 = vpop.permute.xlu1 %32  ;;  %v2178_v0 = vpop.permute.xlu0 %51  ;;  %v1926_v57 = vpack.c.bf16 %v80_v54, %v79_v53  ;;  %v2180_v1 = vpack.c.bf16 %v299_v60, %v298_v59  ;;  %v862_v58 = vadd.f32 %v859_v11, %v2160_v24  ;;  %v863_v2 = vadd.f32 %v860_v26, %v2158_v23 }
  0x90   :  { %v41_v3 = vmul.f32 %v2100_v39, %v2176_v52  ;;  %v60_v4 = vmul.f32 %v2102_v40, %v2178_v0  ;;  %v284_v5 = vmul.f32 %v2039_v13, %v2176_v52  ;;  %v291_v6 = vmul.f32 %v2041_v14, %v2178_v0 }
  0x91   :  { %1927 = vmatpush3.bf16.msra.mxu0 %v1926_v57  ;;  %v2192_v7 = vpack.c.bf16 %v488_v61, %v487_v51  ;;  %v473_v8 = vmul.f32 %v2043_v15, %v2176_v52  ;;  %v480_v9 = vmul.f32 %v2045_v16, %v2178_v0  ;;  %v2198_v10 = vpack.c.bf16 %v677_v63, %v676_v62 }
  0x92   :  { %1737 = vmatprep.subr.mxu0 %v2010_v31  ;;  %v63_v39 = vadd.f32 %v60_v4, %v41_v3  ;;  %v294_v40 = vadd.f32 %v291_v6, %v284_v5  ;;  %v662_v13 = vmul.f32 %v2047_v17, %v2176_v52  ;;  %v669_v14 = vmul.f32 %v2049_v18, %v2178_v0 }
  0x93   :  { %v483_v11 = vadd.f32 %v480_v9, %v473_v8  ;;  %v865_v26 = vmax.f32 %v862_v58, 0.0  ;;  %v866_v43 = vmax.f32 %v863_v2, 0.0  ;;  %v851_v15 = vmul.f32 %v2051_v19, %v2176_v52 }
  0x94   :  { %v74_v44 = vpop.permute.xlu1 %73  ;;  %v672_v16 = vadd.f32 %v669_v14, %v662_v13  ;;  %v858_v45 = vmul.f32 %v2053_v20, %v2178_v0  ;;  %v1049_v46 = vadd.f32 %v1046_v29, %v1039_v12  ;;  %v1051_v47 = vadd.f32 %v1048_v35, %v2160_v24 }
  0x95   :  { %v78_v48 = vadd.f32 %v74_v44, %v63_v39  ;;  %v2210_v49 = vadd.f32 %v294_v40, %v74_v44  ;;  %v2212_v17 = vadd.f32 %v483_v11, %v74_v44  ;;  %v2214_v18 = vpack.c.bf16 %v866_v43, %v865_v26 }
  0x96   :  { %v2216_v50 = vadd.f32 %v672_v16, %v74_v44  ;;  %v861_v53 = vadd.f32 %v858_v45, %v851_v15  ;;  %v1052_v19 = vadd.f32 %v1049_v46, %v2158_v23  ;;  %v1054_v54 = vmax.f32 %v1051_v47, 0.0 }
  0x97   :  { %v81_v59 = vmax.f32 %v78_v48, 0.0  ;;  %v1040_v20 = vmul.f32 %v2055_v21, %v2176_v52  ;;  %v1047_v35 = vmul.f32 %v2057_v22, %v2178_v0  ;;  %v1228_v60 = vmul.f32 %v2059_v25, %v2130_v56 }
  0x98   :  { %v2221_v12 = vadd.f32 %v861_v53, %v74_v44  ;;  %v1055_v29 = vmax.f32 %v1052_v19, 0.0  ;;  %v1234_v51 = vmul.f32 %v2066_v28, %v2104_v41  ;;  %v1235_v61 = vmul.f32 %v2066_v28, %v2128_v55 }
  0x99   :  { %1738 = vmatpush3.msk.msra.mxu0 %vm104_vm1, %v81_v59  ;;  %v1229_v21 = vmul.f32 %v2059_v25, %v2176_v52  ;;  %v1050_v62 = vadd.f32 %v1047_v35, %v1040_v20  ;;  %v1236_v63 = vmul.f32 %v2066_v28, %v2178_v0  ;;  %v1416_v25 = vmul.f32 %v2068_v30, %v2106_v42  ;;  %v2278_v15 = vpop.permute.xlu1 %84 }
  0x9a   :  { %1740 = vmatmul.mubr.msk.f32.vlgmr.msra.gmra.mrb[0].mxu0 %vm97_vm2, %v2079_v33  ;;  %1934 = vmatprep.subr.bf16.mxu0 %v2008_v27  ;;  %v2237_v22 = vpack.c.bf16 %v1055_v29, %v1054_v54  ;;  %v1237_v57 = vadd.f32 %v1234_v51, %v2166_v38  ;;  %v1238_v58 = vadd.f32 %v1235_v61, %v1228_v60  ;;  %v300_v29 = vmax.f32 %v2210_v49, 0.0 }
  0x9b   :  { %1742 = vmatprep.mubr.msk.f32.mxu0 %vm2009_vm0, %v2010_v31  ;;  %v1417_v2 = vmul.f32 %v2068_v30, %v2130_v56  ;;  %v2248_v3 = vadd.f32 %v1050_v62, %v74_v44  ;;  %v1239_v4 = vadd.f32 %v1236_v63, %v1229_v21  ;;  %v1423_v5 = vmul.f32 %v2074_v32, %v2104_v41 }
  0x9c   :  { %v1424_v28 = vmul.f32 %v2074_v32, %v2128_v55  ;;  %v1240_v6 = vadd.f32 %v1237_v57, %v2160_v24  ;;  %v1241_v38 = vadd.f32 %v1238_v58, %v2158_v23  ;;  %v1418_v8 = vmul.f32 %v2068_v30, %v2176_v52 }
  0x9d   :  { %v1425_v42 = vmul.f32 %v2074_v32, %v2178_v0  ;;  %v2262_v56 = vadd.f32 %v1239_v4, %v74_v44  ;;  %v1426_v9 = vadd.f32 %v1423_v5, %v1416_v25  ;;  %v2284_v48 = vpop.permute.xlu1 %94 }
  0x9e   :  { %1743 = vmatmul.mubr.msk.f32.gmra.mrb[2].mxu0 %vm97_vm2, %v2084_v34  ;;  %v1427_v41 = vadd.f32 %v1424_v28, %v1417_v2  ;;  %v1243_v55 = vmax.f32 %v1240_v6, 0.0  ;;  %v1244_v39 = vmax.f32 %v1241_v38, 0.0 }
  0x9f   :  { %1745 = vmatprep.mubr.msk.f32.mxu0 %vm2009_vm0, %v2010_v31  ;;  %v1428_v40 = vadd.f32 %v1425_v42, %v1418_v8  ;;  %v1429_v13 = vadd.f32 %v1426_v9, %v2160_v24  ;;  %v2280_v24 = vpop.permute.xlu0 %89 }
  0xa0   :  { %v1430_v30 = vadd.f32 %v1427_v41, %v2158_v23  ;;  %v2268_v52 = vpack.c.bf16 %v1244_v39, %v1243_v55  ;;  %v489_v41 = vmax.f32 %v2212_v17, 0.0 }
  0xa1   :  { %v2270_v32 = vadd.f32 %v1428_v40, %v74_v44  ;;  %v1432_v0 = vmax.f32 %v1429_v13, 0.0 }
  0xa2   :  { %1746 = vmatmul.mubr.msk.f32.gmra.mrb[4].mxu0 %vm97_vm2, %v2091_v36  ;;  %v1433_v14 = vmax.f32 %v1430_v30, 0.0 }
  0xa3   :  { %1778 = vmatprep.mubr.msk.f32.mxu0 %vm2009_vm0, %v2010_v31 }
  0xa4   :  { %v2276_v11 = vpack.c.bf16 %v1433_v14, %v1432_v0 }
 0x16d   :  { %v174_v26 = vpop.f32.mrb[0].mxu0 }
 0x16e   :  { %v1741_v43 = vpop.f32.mrb[1].mxu0  ;;  %v175_v23 = vadd.f32 %v174_v26, %v2278_v15 }
 0x170   :  { %v188_v46 = vmax.f32 %v175_v23, 0.0 }
 0x171   :  { %v179_v44 = vpop.f32.mrb[2].mxu0 }
 0x172   :  { %v1744_v16 = vpop.f32.mrb[3].mxu0  ;;  %v180_v45 = vadd.f32 %v179_v44, %v2280_v24 }
 0x174   :  { %v189_v47 = vmax.f32 %v180_v45, 0.0 }
 0x175   :  { %v184_v53 = vpop.f32.mrb[4].mxu0 }
 0x176   :  { %v185_v19 = vadd.f32 %v184_v53, %v2284_v48  ;;  %v1747_v54 = vpop.f32.mrb[5].mxu0  ;;  %v1929_v59 = vpack.c.bf16 %v189_v47, %v188_v46 }
 0x178   :  { %1930 = vmatpush3.bf16.msra.mxu1 %v1929_v59  ;;  %v190_v20 = vmax.f32 %v185_v19, 0.0  ;;  %v678_v59 = vmax.f32 %v2216_v50, 0.0 }
 0x179   :  { %1752 = vmatprep.subr.mxu1 %v2010_v31 }
 0x17c   :  { %1753 = vmatpush3.msk.msra.mxu1 %vm104_vm1, %v190_v20 }
 0x17d   :  { %1755 = vmatmul.mubr.msk.f32.vlgmr.msra.gmra.mrb[0].mxu1 %vm97_vm2, %v2097_v37  ;;  %1931 = vmatprep.subr.bf16.mxu1 %v2008_v27 }
 0x17e   :  { %1933 = vmatpush3.bf16.msra.mxu1 %v2180_v1  ;;  %1763 = vmatprep.mubr.msk.f32.mxu1 %vm2009_vm0, %v2010_v31  ;;  %v2311_v1 = vpop.permute.xlu1 %193 }
 0x17f   :  { %1761 = vmatprep.subr.mxu1 %v2010_v31 }
 0x182   :  { %1762 = vmatpush3.msk.msra.mxu1 %vm104_vm1, %v300_v29 }
 0x183   :  { %1764 = vmatmul.mubr.msk.f32.vlgmr.msra.gmra.mrb[2].mxu1 %vm97_vm2, %v2079_v33  ;;  %1940 = vmatprep.subr.bf16.mxu1 %v2008_v27 }
 0x184   :  { %1766 = vmatprep.mubr.msk.f32.mxu1 %vm2009_vm0, %v2010_v31 }
 0x187   :  { %1767 = vmatmul.mubr.msk.f32.gmra.mrb[4].mxu1 %vm97_vm2, %v2084_v34 }
 0x188   :  { %1769 = vmatprep.mubr.msk.f32.mxu1 %vm2009_vm0, %v2010_v31 }
 0x18b   :  { %1770 = vmatmul.mubr.msk.f32.gmra.mrb[6].mxu1 %vm97_vm2, %v2091_v36 }
 0x18c   :  { %1802 = vmatprep.mubr.msk.f32.mxu1 %vm2009_vm0, %v2010_v31 }
 0x250   :  { %v267_v49 = vpop.f32.mrb[0].mxu1 }
 0x251   :  { %v268_v35 = vadd.f32 %v267_v49, %v2311_v1  ;;  %v1756_v60 = vpop.f32.mrb[1].mxu1 }
 0x253   :  { %v271_v51 = vmul.f32 0.5, %v268_v35 }
 0x255   :  { %1989 = vtanh.f32 %v271_v51 }
 0x256   :  { %v370_v61 = vpop.f32.mrb[2].mxu1 }
 0x257   :  { %v1765_v21 = vpop.f32.mrb[3].mxu1  ;;  %v371_v62 = vadd.f32 %v370_v61, %v2278_v15 }
 0x259   :  { %v384_v25 = vmax.f32 %v371_v62, 0.0 }
 0x25a   :  { %v375_v63 = vpop.f32.mrb[4].mxu1 }
 0x25b   :  { %v376_v57 = vadd.f32 %v375_v63, %v2280_v24  ;;  %v1768_v58 = vpop.f32.mrb[5].mxu1 }
 0x25d   :  { %v385_v2 = vmax.f32 %v376_v57, 0.0 }
 0x25e   :  { %v380_v4 = vpop.f32.mrb[6].mxu1 }
 0x25f   :  { %v1990_v5 = vpop.eup %1989  ;;  %v1935_v28 = vpack.c.bf16 %v385_v2, %v384_v25  ;;  %v381_v6 = vadd.f32 %v380_v4, %v2284_v48  ;;  %v1771_v38 = vpop.f32.mrb[7].mxu1 }
 0x260   :  { %v273_v8 = vmul.f32 0.5, %v1990_v5  ;;  %v867_v38 = vmax.f32 %v2221_v12, 0.0 }
 0x261   :  { %1936 = vmatpush3.bf16.msra.mxu0 %v1935_v28  ;;  %v386_v9 = vmax.f32 %v381_v6, 0.0 }
 0x262   :  { %v274_v42 = vadd.f32 0.5, %v273_v8  ;;  %1776 = vmatprep.subr.mxu0 %v2010_v31 }
 0x264   :  { %275 = vst [vmem:[%s2561_s2] sm:$0x1] %v274_v42  ;;  %276 = vst [vmem:[%s2561_s2 + $0x7] sm:$0x2] %v274_v42 }
 0x265   :  { %277 = vst [vmem:[%s2561_s2 + $0xe] sm:$0x4] %v274_v42  ;;  %1777 = vmatpush3.msk.msra.mxu0 %vm104_vm1, %v386_v9 }
 0x266   :  { %1779 = vmatmul.mubr.msk.f32.vlgmr.msra.gmra.mrb[6].mxu0 %vm97_vm2, %v2097_v37  ;;  %1937 = vmatprep.subr.bf16.mxu0 %v2008_v27 }
 0x267   :  { %1939 = vmatpush3.bf16.msra.mxu0 %v2192_v7  ;;  %1787 = vmatprep.mubr.msk.f32.mxu0 %vm2009_vm0, %v2010_v31 }
 0x268   :  { %1785 = vmatprep.subr.mxu0 %v2010_v31 }
 0x26b   :  { %1786 = vmatpush3.msk.msra.mxu0 %vm104_vm1, %v489_v41 }
 0x26c   :  { %1788 = vmatmul.mubr.msk.f32.vlgmr.msra.gmra.mrb[8].mxu0 %vm97_vm2, %v2079_v33  ;;  %1946 = vmatprep.subr.bf16.mxu0 %v2008_v27 }
 0x26d   :  { %1790 = vmatprep.mubr.msk.f32.mxu0 %vm2009_vm0, %v2010_v31 }
 0x270   :  { %1791 = vmatmul.mubr.msk.f32.gmra.mrb[10].mxu0 %vm97_vm2, %v2084_v34 }
 0x271   :  { %1793 = vmatprep.mubr.msk.f32.mxu0 %vm2009_vm0, %v2010_v31 }
 0x274   :  { %1794 = vmatmul.mubr.msk.f32.gmra.mrb[12].mxu0 %vm97_vm2, %v2091_v36 }
 0x275   :  { %1826 = vmatprep.mubr.msk.f32.mxu0 %vm2009_vm0, %v2010_v31 }
 0x339   :  { %v456_v7 = vpop.f32.mrb[6].mxu0 }
 0x33a   :  { %v457_v17 = vadd.f32 %v456_v7, %v2311_v1  ;;  %v1780_v55 = vpop.f32.mrb[7].mxu0 }
 0x33c   :  { %v460_v39 = vmul.f32 0.5, %v457_v17 }
 0x33e   :  { %1991 = vtanh.f32 %v460_v39 }
 0x33f   :  { %v559_v40 = vpop.f32.mrb[8].mxu0 }
 0x340   :  { %v1789_v13 = vpop.f32.mrb[9].mxu0  ;;  %v560_v30 = vadd.f32 %v559_v40, %v2278_v15 }
 0x342   :  { %v573_v43 = vmax.f32 %v560_v30, 0.0 }
 0x343   :  { %v564_v0 = vpop.f32.mrb[10].mxu0 }
 0x344   :  { %v565_v14 = vadd.f32 %v564_v0, %v2280_v24  ;;  %v1792_v26 = vpop.f32.mrb[11].mxu0 }
 0x346   :  { %v574_v23 = vmax.f32 %v565_v14, 0.0 }
 0x347   :  { %v569_v44 = vpop.f32.mrb[12].mxu0 }
 0x348   :  { %v1992_v16 = vpop.eup %1991  ;;  %v1941_v45 = vpack.c.bf16 %v574_v23, %v573_v43  ;;  %v570_v46 = vadd.f32 %v569_v44, %v2284_v48  ;;  %v1795_v47 = vpop.f32.mrb[13].mxu0 }
 0x349   :  { %v462_v53 = vmul.f32 0.5, %v1992_v16 }
 0x34a   :  { %1942 = vmatpush3.bf16.msra.mxu1 %v1941_v45  ;;  %v575_v54 = vmax.f32 %v570_v46, 0.0  ;;  %v1056_v45 = vmax.f32 %v2248_v3, 0.0 }
 0x34b   :  { %v463_v19 = vadd.f32 0.5, %v462_v53  ;;  %1800 = vmatprep.subr.mxu1 %v2010_v31 }
 0x34d   :  { %464 = vst [vmem:[%s2561_s2 + $0x1] sm:$0x1] %v463_v19  ;;  %465 = vst [vmem:[%s2561_s2 + $0x8] sm:$0x2] %v463_v19 }
 0x34e   :  { %466 = vst [vmem:[%s2561_s2 + $0xf] sm:$0x4] %v463_v19  ;;  %1801 = vmatpush3.msk.msra.mxu1 %vm104_vm1, %v575_v54 }
 0x34f   :  { %1803 = vmatmul.mubr.msk.f32.vlgmr.msra.gmra.mrb[8].mxu1 %vm97_vm2, %v2097_v37  ;;  %1943 = vmatprep.subr.bf16.mxu1 %v2008_v27 }
 0x350   :  { %1945 = vmatpush3.bf16.msra.mxu1 %v2198_v10  ;;  %1811 = vmatprep.mubr.msk.f32.mxu1 %vm2009_vm0, %v2010_v31 }
 0x351   :  { %1809 = vmatprep.subr.mxu1 %v2010_v31 }
 0x354   :  { %1810 = vmatpush3.msk.msra.mxu1 %vm104_vm1, %v678_v59 }
 0x355   :  { %1812 = vmatmul.mubr.msk.f32.vlgmr.msra.gmra.mrb[10].mxu1 %vm97_vm2, %v2079_v33  ;;  %1952 = vmatprep.subr.bf16.mxu1 %v2008_v27 }
 0x356   :  { %1814 = vmatprep.mubr.msk.f32.mxu1 %vm2009_vm0, %v2010_v31 }
 0x359   :  { %1815 = vmatmul.mubr.msk.f32.gmra.mrb[12].mxu1 %vm97_vm2, %v2084_v34 }
 0x35a   :  { %1817 = vmatprep.mubr.msk.f32.mxu1 %vm2009_vm0, %v2010_v31 }
 0x35d   :  { %1818 = vmatmul.mubr.msk.f32.gmra.mrb[14].mxu1 %vm97_vm2, %v2091_v36 }
 0x35e   :  { %1850 = vmatprep.mubr.msk.f32.mxu1 %vm2009_vm0, %v2010_v31 }
 0x422   :  { %v645_v10 = vpop.f32.mrb[8].mxu1 }
 0x423   :  { %v646_v50 = vadd.f32 %v645_v10, %v2311_v1  ;;  %v1804_v20 = vpop.f32.mrb[9].mxu1 }
 0x425   :  { %v649_v29 = vmul.f32 0.5, %v646_v50 }
 0x427   :  { %1993 = vtanh.f32 %v649_v29 }
 0x428   :  { %v748_v49 = vpop.f32.mrb[10].mxu1 }
 0x429   :  { %v1813_v35 = vpop.f32.mrb[11].mxu1  ;;  %v749_v60 = vadd.f32 %v748_v49, %v2278_v15 }
 0x42b   :  { %v762_v62 = vmax.f32 %v749_v60, 0.0 }
 0x42c   :  { %v753_v51 = vpop.f32.mrb[12].mxu1 }
 0x42d   :  { %v754_v61 = vadd.f32 %v753_v51, %v2280_v24  ;;  %v1816_v21 = vpop.f32.mrb[13].mxu1 }
 0x42f   :  { %v763_v63 = vmax.f32 %v754_v61, 0.0 }
 0x430   :  { %v758_v57 = vpop.f32.mrb[14].mxu1 }
 0x431   :  { %v1994_v58 = vpop.eup %1993  ;;  %v1947_v25 = vpack.c.bf16 %v763_v63, %v762_v62  ;;  %v759_v2 = vadd.f32 %v758_v57, %v2284_v48  ;;  %v1819_v4 = vpop.f32.mrb[15].mxu1  ;;  %v1245_v57 = vmax.f32 %v2262_v56, 0.0 }
 0x432   :  { %v651_v5 = vmul.f32 0.5, %v1994_v58 }
 0x433   :  { %1948 = vmatpush3.bf16.msra.mxu0 %v1947_v25  ;;  %v764_v6 = vmax.f32 %v759_v2, 0.0 }
 0x434   :  { %v652_v28 = vadd.f32 0.5, %v651_v5  ;;  %1824 = vmatprep.subr.mxu0 %v2010_v31 }
 0x436   :  { %653 = vst [vmem:[%s2561_s2 + $0x2] sm:$0x1] %v652_v28  ;;  %654 = vst [vmem:[%s2561_s2 + $0x9] sm:$0x2] %v652_v28 }
 0x437   :  { %655 = vst [vmem:[%s2561_s2 + $0x10] sm:$0x4] %v652_v28  ;;  %1825 = vmatpush3.msk.msra.mxu0 %vm104_vm1, %v764_v6 }
 0x438   :  { %1827 = vmatmul.mubr.msk.f32.vlgmr.msra.gmra.mrb[14].mxu0 %vm97_vm2, %v2097_v37  ;;  %1949 = vmatprep.subr.bf16.mxu0 %v2008_v27 }
 0x439   :  { %1951 = vmatpush3.bf16.msra.mxu0 %v2214_v18  ;;  %1835 = vmatprep.mubr.msk.f32.mxu0 %vm2009_vm0, %v2010_v31 }
 0x43a   :  { %1833 = vmatprep.subr.mxu0 %v2010_v31 }
 0x43d   :  { %1834 = vmatpush3.msk.msra.mxu0 %vm104_vm1, %v867_v38 }
 0x43e   :  { %1836 = vmatmul.mubr.msk.f32.vlgmr.msra.gmra.mrb[16].mxu0 %vm97_vm2, %v2079_v33  ;;  %1958 = vmatprep.subr.bf16.mxu0 %v2008_v27 }
 0x43f   :  { %1838 = vmatprep.mubr.msk.f32.mxu0 %vm2009_vm0, %v2010_v31 }
 0x442   :  { %1839 = vmatmul.mubr.msk.f32.gmra.mrb[18].mxu0 %vm97_vm2, %v2084_v34 }
 0x443   :  { %1841 = vmatprep.mubr.msk.f32.mxu0 %vm2009_vm0, %v2010_v31 }
 0x446   :  { %1842 = vmatmul.mubr.msk.f32.gmra.mrb[20].mxu0 %vm97_vm2, %v2091_v36 }
 0x447   :  { %1874 = vmatprep.mubr.msk.f32.mxu0 %vm2009_vm0, %v2010_v31 }
 0x50b   :  { %v834_v18 = vpop.f32.mrb[14].mxu0 }
 0x50c   :  { %v835_v12 = vadd.f32 %v834_v18, %v2311_v1  ;;  %v1828_v8 = vpop.f32.mrb[15].mxu0 }
 0x50e   :  { %v838_v42 = vmul.f32 0.5, %v835_v12 }
 0x510   :  { %1995 = vtanh.f32 %v838_v42 }
 0x511   :  { %v937_v9 = vpop.f32.mrb[16].mxu0 }
 0x512   :  { %v1837_v41 = vpop.f32.mrb[17].mxu0  ;;  %v938_v7 = vadd.f32 %v937_v9, %v2278_v15 }
 0x514   :  { %v951_v40 = vmax.f32 %v938_v7, 0.0 }
 0x515   :  { %v942_v17 = vpop.f32.mrb[18].mxu0 }
 0x516   :  { %v943_v55 = vadd.f32 %v942_v17, %v2280_v24  ;;  %v1840_v39 = vpop.f32.mrb[19].mxu0 }
 0x518   :  { %v952_v13 = vmax.f32 %v943_v55, 0.0 }
 0x519   :  { %v947_v30 = vpop.f32.mrb[20].mxu0 }
 0x51a   :  { %v1996_v0 = vpop.eup %1995  ;;  %v1953_v14 = vpack.c.bf16 %v952_v13, %v951_v40  ;;  %v948_v26 = vadd.f32 %v947_v30, %v2284_v48  ;;  %v1843_v43 = vpop.f32.mrb[21].mxu0  ;;  %v1434_v40 = vmax.f32 %v2270_v32, 0.0 }
 0x51b   :  { %v840_v23 = vmul.f32 0.5, %v1996_v0 }
 0x51c   :  { %1954 = vmatpush3.bf16.msra.mxu1 %v1953_v14  ;;  %v953_v16 = vmax.f32 %v948_v26, 0.0 }
 0x51d   :  { %v841_v44 = vadd.f32 0.5, %v840_v23  ;;  %1848 = vmatprep.subr.mxu1 %v2010_v31 }
 0x51f   :  { %842 = vst [vmem:[%s2561_s2 + $0x3] sm:$0x1] %v841_v44  ;;  %843 = vst [vmem:[%s2561_s2 + $0xa] sm:$0x2] %v841_v44 }
 0x520   :  { %844 = vst [vmem:[%s2561_s2 + $0x11] sm:$0x4] %v841_v44  ;;  %1849 = vmatpush3.msk.msra.mxu1 %vm104_vm1, %v953_v16 }
 0x521   :  { %1851 = vmatmul.mubr.msk.f32.vlgmr.msra.gmra.mrb[16].mxu1 %vm97_vm2, %v2097_v37  ;;  %1955 = vmatprep.subr.bf16.mxu1 %v2008_v27 }
 0x522   :  { %1957 = vmatpush3.bf16.msra.mxu1 %v2237_v22  ;;  %1859 = vmatprep.mubr.msk.f32.mxu1 %vm2009_vm0, %v2010_v31 }
 0x523   :  { %1857 = vmatprep.subr.mxu1 %v2010_v31 }
 0x526   :  { %1858 = vmatpush3.msk.msra.mxu1 %vm104_vm1, %v1056_v45 }
 0x527   :  { %1860 = vmatmul.mubr.msk.f32.vlgmr.msra.gmra.mrb[18].mxu1 %vm97_vm2, %v2079_v33  ;;  %1964 = vmatprep.subr.bf16.mxu1 %v2008_v27 }
 0x528   :  { %1862 = vmatprep.mubr.msk.f32.mxu1 %vm2009_vm0, %v2010_v31 }
 0x52b   :  { %1863 = vmatmul.mubr.msk.f32.gmra.mrb[20].mxu1 %vm97_vm2, %v2084_v34 }
 0x52c   :  { %1865 = vmatprep.mubr.msk.f32.mxu1 %vm2009_vm0, %v2010_v31 }
 0x52f   :  { %1866 = vmatmul.mubr.msk.f32.gmra.mrb[22].mxu1 %vm97_vm2, %v2091_v36 }
 0x530   :  { %1898 = vmatprep.mubr.msk.f32.mxu1 %vm2009_vm0, %v2010_v31 }
 0x5f4   :  { %v1023_v22 = vpop.f32.mrb[16].mxu1 }
 0x5f5   :  { %v1024_v3 = vadd.f32 %v1023_v22, %v2311_v1  ;;  %v1852_v46 = vpop.f32.mrb[17].mxu1 }
 0x5f7   :  { %v1027_v47 = vmul.f32 0.5, %v1024_v3 }
 0x5f9   :  { %1997 = vtanh.f32 %v1027_v47 }
 0x5fa   :  { %v1126_v53 = vpop.f32.mrb[18].mxu1 }
 0x5fb   :  { %v1861_v19 = vpop.f32.mrb[19].mxu1  ;;  %v1127_v54 = vadd.f32 %v1126_v53, %v2278_v15 }
 0x5fd   :  { %v1140_v20 = vmax.f32 %v1127_v54, 0.0 }
 0x5fe   :  { %v1131_v59 = vpop.f32.mrb[20].mxu1 }
 0x5ff   :  { %v1132_v10 = vadd.f32 %v1131_v59, %v2280_v24  ;;  %v1864_v50 = vpop.f32.mrb[21].mxu1 }
 0x601   :  { %v1141_v29 = vmax.f32 %v1132_v10, 0.0 }
 0x602   :  { %v1136_v49 = vpop.f32.mrb[22].mxu1 }
 0x603   :  { %v1998_v35 = vpop.eup %1997  ;;  %v1959_v60 = vpack.c.bf16 %v1141_v29, %v1140_v20  ;;  %v1137_v51 = vadd.f32 %v1136_v49, %v2284_v48  ;;  %v1867_v61 = vpop.f32.mrb[23].mxu1 }
 0x604   :  { %v1029_v21 = vmul.f32 0.5, %v1998_v35 }
 0x605   :  { %1960 = vmatpush3.bf16.msra.mxu0 %v1959_v60  ;;  %v1142_v63 = vmax.f32 %v1137_v51, 0.0 }
 0x606   :  { %v1030_v62 = vadd.f32 0.5, %v1029_v21  ;;  %1872 = vmatprep.subr.mxu0 %v2010_v31 }
 0x608   :  { %1031 = vst [vmem:[%s2561_s2 + $0x4] sm:$0x1] %v1030_v62  ;;  %1032 = vst [vmem:[%s2561_s2 + $0xb] sm:$0x2] %v1030_v62 }
 0x609   :  { %1033 = vst [vmem:[%s2561_s2 + $0x12] sm:$0x4] %v1030_v62  ;;  %1873 = vmatpush3.msk.msra.mxu0 %vm104_vm1, %v1142_v63 }
 0x60a   :  { %1875 = vmatmul.mubr.msk.f32.vlgmr.msra.gmra.mrb[22].mxu0 %vm97_vm2, %v2097_v37  ;;  %1961 = vmatprep.subr.bf16.mxu0 %v2008_v27 }
 0x60b   :  { %1963 = vmatpush3.bf16.msra.mxu0 %v2268_v52  ;;  %1883 = vmatprep.mubr.msk.f32.mxu0 %vm2009_vm0, %v2010_v31 }
 0x60c   :  { %1881 = vmatprep.subr.mxu0 %v2010_v31 }
 0x60f   :  { %1882 = vmatpush3.msk.msra.mxu0 %vm104_vm1, %v1245_v57 }
 0x610   :  { %1884 = vmatmul.mubr.msk.f32.vlgmr.msra.gmra.mrb[24].mxu0 %vm97_vm2, %v2079_v33  ;;  %1970 = vmatprep.subr.bf16.mxu0 %v2008_v27 }
 0x611   :  { %1886 = vmatprep.mubr.msk.f32.mxu0 %vm2009_vm0, %v2010_v31 }
 0x614   :  { %1887 = vmatmul.mubr.msk.f32.gmra.mrb[26].mxu0 %vm97_vm2, %v2084_v34 }
 0x615   :  { %1889 = vmatprep.mubr.msk.f32.mxu0 %vm2009_vm0, %v2010_v31 }
 0x618   :  { %1890 = vmatmul.mubr.msk.f32.gmra.mrb[28].mxu0 %vm97_vm2, %v2091_v36 }
 0x619   :  { %1922 = vmatprep.mubr.msk.f32.mxu0 %vm2009_vm0, %v2010_v31 }
 0x6dd   :  { %v1212_v56 = vpop.f32.mrb[22].mxu0 }
 0x6de   :  { %v1213_v52 = vadd.f32 %v1212_v56, %v2311_v1  ;;  %v1876_v58 = vpop.f32.mrb[23].mxu0 }
 0x6e0   :  { %v1216_v25 = vmul.f32 0.5, %v1213_v52 }
 0x6e2   :  { %1999 = vtanh.f32 %v1216_v25 }
 0x6e3   :  { %v1315_v2 = vpop.f32.mrb[24].mxu0 }
 0x6e4   :  { %v1885_v4 = vpop.f32.mrb[25].mxu0  ;;  %v1316_v5 = vadd.f32 %v1315_v2, %v2278_v15 }
 0x6e6   :  { %v1329_v18 = vmax.f32 %v1316_v5, 0.0 }
 0x6e7   :  { %v1320_v28 = vpop.f32.mrb[26].mxu0 }
 0x6e8   :  { %v1321_v6 = vadd.f32 %v1320_v28, %v2280_v24  ;;  %v1888_v38 = vpop.f32.mrb[27].mxu0 }
 0x6ea   :  { %v1330_v12 = vmax.f32 %v1321_v6, 0.0 }
 0x6eb   :  { %v1325_v8 = vpop.f32.mrb[28].mxu0 }
 0x6ec   :  { %v2000_v42 = vpop.eup %1999  ;;  %v1965_v9 = vpack.c.bf16 %v1330_v12, %v1329_v18  ;;  %v1326_v41 = vadd.f32 %v1325_v8, %v2284_v48  ;;  %v1891_v7 = vpop.f32.mrb[29].mxu0 }
 0x6ed   :  { %v1218_v17 = vmul.f32 0.5, %v2000_v42 }
 0x6ee   :  { %1966 = vmatpush3.bf16.msra.mxu1 %v1965_v9  ;;  %v1331_v39 = vmax.f32 %v1326_v41, 0.0 }
 0x6ef   :  { %v1219_v55 = vadd.f32 0.5, %v1218_v17  ;;  %1896 = vmatprep.subr.mxu1 %v2010_v31 }
 0x6f1   :  { %1220 = vst [vmem:[%s2561_s2 + $0x5] sm:$0x1] %v1219_v55  ;;  %1221 = vst [vmem:[%s2561_s2 + $0xc] sm:$0x2] %v1219_v55 }
 0x6f2   :  { %1222 = vst [vmem:[%s2561_s2 + $0x13] sm:$0x4] %v1219_v55  ;;  %1897 = vmatpush3.msk.msra.mxu1 %vm104_vm1, %v1331_v39 }
 0x6f3   :  { %1899 = vmatmul.mubr.msk.f32.vlgmr.msra.gmra.mrb[24].mxu1 %vm97_vm2, %v2097_v37  ;;  %1967 = vmatprep.subr.bf16.mxu1 %v2008_v27 }
 0x6f4   :  { %1969 = vmatpush3.bf16.msra.mxu1 %v2276_v11  ;;  %1907 = vmatprep.mubr.msk.f32.mxu1 %vm2009_vm0, %v2010_v31 }
 0x6f5   :  { %1905 = vmatprep.subr.mxu1 %v2010_v31 }
 0x6f8   :  { %1906 = vmatpush3.msk.msra.mxu1 %vm104_vm1, %v1434_v40 }
 0x6f9   :  { %1908 = vmatmul.mubr.msk.f32.vlgmr.msra.gmra.mrb[26].mxu1 %vm97_vm2, %v2079_v33 }
 0x6fa   :  { %1910 = vmatprep.mubr.msk.f32.mxu1 %vm2009_vm0, %v2010_v31 }
 0x6fd   :  { %1911 = vmatmul.mubr.msk.f32.gmra.mrb[28].mxu1 %vm97_vm2, %v2084_v34 }
 0x6fe   :  { %1913 = vmatprep.mubr.msk.f32.mxu1 %vm2009_vm0, %v2010_v31 }
 0x701   :  { %1914 = vmatmul.mubr.msk.f32.gmra.mrb[30].mxu1 %vm97_vm2, %v2091_v36 }
 0x7c6   :  { %v1401_v27 = vpop.f32.mrb[24].mxu1 }
 0x7c7   :  { %v1402_v32 = vadd.f32 %v1401_v27, %v2311_v1  ;;  %v1900_v11 = vpop.f32.mrb[25].mxu1 }
 0x7c9   :  { %v1405_v13 = vmul.f32 0.5, %v1402_v32 }
 0x7cb   :  { %2001 = vtanh.f32 %v1405_v13 }
 0x7cc   :  { %v1504_v30 = vpop.f32.mrb[26].mxu1 }
 0x7cd   :  { %v1909_v33 = vpop.f32.mrb[27].mxu1  ;;  %v1505_v0 = vadd.f32 %v1504_v30, %v2278_v15 }
 0x7cf   :  { %v1518_v43 = vmax.f32 %v1505_v0, 0.0 }
 0x7d0   :  { %v1509_v14 = vpop.f32.mrb[28].mxu1 }
 0x7d1   :  { %v1510_v26 = vadd.f32 %v1509_v14, %v2280_v24  ;;  %v1912_v34 = vpop.f32.mrb[29].mxu1 }
 0x7d3   :  { %v1519_v23 = vmax.f32 %v1510_v26, 0.0 }
 0x7d4   :  { %v1514_v44 = vpop.f32.mrb[30].mxu1 }
 0x7d5   :  { %v2002_v16 = vpop.eup %2001  ;;  %v1971_v45 = vpack.c.bf16 %v1519_v23, %v1518_v43  ;;  %v1515_v36 = vadd.f32 %v1514_v44, %v2284_v48  ;;  %v1915_v22 = vpop.f32.mrb[31].mxu1 }
 0x7d6   :  { %v1407_v3 = vmul.f32 0.5, %v2002_v16 }
 0x7d7   :  { %1972 = vmatpush3.bf16.msra.mxu0 %v1971_v45  ;;  %v1520_v47 = vmax.f32 %v1515_v36, 0.0 }
 0x7d8   :  { %v1408_v46 = vadd.f32 0.5, %v1407_v3  ;;  %1920 = vmatprep.subr.mxu0 %v2010_v31 }
 0x7da   :  { %1409 = vst [vmem:[%s2561_s2 + $0x6] sm:$0x1] %v1408_v46  ;;  %1410 = vst [vmem:[%s2561_s2 + $0xd] sm:$0x2] %v1408_v46 }
 0x7db   :  { %1411 = vst [vmem:[%s2561_s2 + $0x14] sm:$0x4] %v1408_v46  ;;  %1921 = vmatpush3.msk.msra.mxu0 %vm104_vm1, %v1520_v47 }
 0x7dc   :  { %1923 = vmatmul.mubr.msk.f32.vlgmr.msra.gmra.mrb[30].mxu0 %vm97_vm2, %v2097_v37 }
 0x8af   :  { %v1590_v15 = vpop.f32.mrb[30].mxu0 }
 0x8b0   :  { %v1591_v31 = vadd.f32 %v1590_v15, %v2311_v1  ;;  %v1924_v24 = vpop.f32.mrb[31].mxu0 }
 0x8b2   :  { %v1594_v48 = vmul.f32 0.5, %v1591_v31 }
 0x8b4   :  { %2003 = vtanh.f32 %v1594_v48 }
 0x8be   :  { %v2004_v53 = vpop.eup %2003 }
 0x8bf   :  { %v1596_v19 = vmul.f32 0.5, %v2004_v53 }
 0x8c1   :  { %v1597_v54 = vadd.f32 0.5, %v1596_v19 }
 0x8c3   :  { %1598 = vst [vmem:[%s2561_s2 + $0x7] sm:$0x1] %v1597_v54  ;;  %1599 = vst [vmem:[%s2561_s2 + $0xe] sm:$0x2] %v1597_v54 }
 0x8c4   :  { %1600 = vst [vmem:[%s2561_s2 + $0x15] sm:$0x4] %v1597_v54 }

</bundles_post_ra>
